<compile_context>
chip_gen: v7x
topology: tpu7x:2x2x1
jax: 0.10.0
libtpu: 0.0.40
codegen_flags: <defaults>
</compile_context>

<pallas_src>
import jax
import jax.numpy as jnp
from jax.experimental import pallas as pl
from jax.experimental.pallas import tpu as pltpu

# Original hidden sizes (PyTorch spec) and lane-aligned padded versions.
H1, H2 = 400, 300
H1P, H2P = 512, 384

_TB_DEFAULT = 256  # batch tile; fits comfortably in VMEM on v5e/v6e/v7x


def _round_up(n, m):
    return ((n + m - 1) // m) * m


# ---------------------------------------------------------------------------
# Kernel: one batch tile of the twin-Q critic.
# ---------------------------------------------------------------------------
def _critic_kernel(x_ref, u_ref,
                   wfs_ref, wfa_ref, bf_ref,
                   w2_ref, b2_ref, w5_ref, b5_ref,
                   wo_ref, bo_ref,
                   q_ref):
    cd = wfs_ref.dtype  # compute dtype for MXU operands (bf16 by default)
    x = x_ref[...]
    u = u_ref[...]

    # ---- fused first layer (Q1 | Q2); xu-concat replaced by split weights ----
    h = (jnp.dot(x.astype(cd), wfs_ref[...], preferred_element_type=jnp.float32)
         + jnp.dot(u.astype(cd), wfa_ref[...], preferred_element_type=jnp.float32)
         + bf_ref[...])
    h = jnp.maximum(h, 0.0)
    h1 = h[:, :H1P]
    h2 = h[:, H1P:]

    # ---- second layers (per head) ----
    g1 = jnp.maximum(
        jnp.dot(h1.astype(cd), w2_ref[...], preferred_element_type=jnp.float32)
        + b2_ref[...], 0.0)
    g2 = jnp.maximum(
        jnp.dot(h2.astype(cd), w5_ref[...], preferred_element_type=jnp.float32)
        + b5_ref[...], 0.0)

    # ---- fused output heads -> (TB, 2): column 0 = q1, column 1 = q2 ----
    g = jnp.concatenate([g1, g2], axis=1)
    q = (jnp.dot(g.astype(cd), wo_ref[...], preferred_element_type=jnp.float32)
         + bo_ref[...])
    q_ref[...] = q.astype(q_ref.dtype)


# ---------------------------------------------------------------------------
# Wrapper
# ---------------------------------------------------------------------------
def critic_forward(x, u, prepared_params, *, block_b=_TB_DEFAULT):
    """Twin-Q critic forward. Returns (q1, q2), each (B, 1) float32."""
    (wf_s, wf_a, bf, w2p, b2p, w5p, b5p, wo, bo) = prepared_params
    B, state_dim = x.shape
    action_dim = u.shape[1]

    # Batch tile: sublane-aligned, full blocks only (pad batch if needed).
    tb = min(block_b, _round_up(B, 8))
    B_pad = _round_up(B, tb)
    if B_pad != B:
        x = jnp.pad(x, ((0, B_pad - B), (0, 0)))
        u = jnp.pad(u, ((0, B_pad - B), (0, 0)))

    def batch_spec(d):
        return pl.BlockSpec((tb, d), lambda i: (i, 0))

    def const_spec(a):  # same block every grid step -> stays VMEM resident
        return pl.BlockSpec(a.shape, lambda i: (0, 0))

    q = pl.pallas_call(
        _critic_kernel,
        out_shape=jax.ShapeDtypeStruct((B_pad, 2), jnp.float32),
        grid=(B_pad // tb,),
        in_specs=[batch_spec(state_dim), batch_spec(action_dim),
                  const_spec(wf_s), const_spec(wf_a), const_spec(bf),
                  const_spec(w2p), const_spec(b2p),
                  const_spec(w5p), const_spec(b5p),
                  const_spec(wo), const_spec(bo)],
        out_specs=pl.BlockSpec((tb, 2), lambda i: (i, 0)),
        compiler_params=pltpu.CompilerParams(
            dimension_semantics=("parallel",),
            vmem_limit_bytes=32 << 20),
    )(x, u, wf_s, wf_a, bf, w2p, b2p, w5p, b5p, wo, bo)

    return q[:B, 0:1], q[:B, 1:2]


# ---------------------------------------------------------------------------
# Parameters: raw fp32 (PyTorch-equivalent) init + padded/fused/bf16 prep.
# ---------------------------------------------------------------------------
def init_critic_params(key, state_dim, action_dim):
    """Raw fp32 params, PyTorch nn.Linear default init, stored as (in, out)."""
    in_dim = state_dim + action_dim
    dims = [(in_dim, H1), (H1, H2), (H2, 1),   # Q1: layer_1..3
            (in_dim, H1), (H1, H2), (H2, 1)]   # Q2: layer_4..6
    params = []
    for fan_in, fan_out in dims:
        key, kw, kb = jax.random.split(key, 3)
        bound = 1.0 / (fan_in ** 0.5)
        w = jax.random.uniform(kw, (fan_in, fan_out), jnp.float32, -bound, bound)
        b = jax.random.uniform(kb, (1, fan_out), jnp.float32, -bound, bound)
        params.extend([w, b])
    return tuple(params)


def prepare_critic_params(raw_params, state_dim, action_dim,
                          compute_dtype=jnp.bfloat16):
    """Pad to lane-aligned sizes, fuse layer-1 / output heads, cast weights."""
    (w1, b1, w2, b2, w3, b3, w4, b4, w5, b5, w6, b6) = raw_params
    in_dim = state_dim + action_dim

    def pad2(a, shape):
        return jnp.zeros(shape, a.dtype).at[:a.shape[0], :a.shape[1]].set(a)

    # Fused, padded first layer: (in_dim, 2*H1P), split row-wise (state|action).
    wf = jnp.concatenate([pad2(w1, (in_dim, H1P)), pad2(w4, (in_dim, H1P))], axis=1)
    wf_s, wf_a = wf[:state_dim], wf[state_dim:]
    bf = jnp.concatenate([pad2(b1, (1, H1P)), pad2(b4, (1, H1P))], axis=1)

    # Padded second layers.
    w2p, b2p = pad2(w2, (H1P, H2P)), pad2(b2, (1, H2P))
    w5p, b5p = pad2(w5, (H1P, H2P)), pad2(b5, (1, H2P))

    # Fused block-diagonal output head: (2*H2P, 2); col 0 = Q1, col 1 = Q2.
    wo = jnp.zeros((2 * H2P, 2), jnp.float32)
    wo = wo.at[:H2, 0].set(w3[:, 0]).at[H2P:H2P + H2, 1].set(w6[:, 0])
    bo = jnp.concatenate([b3, b6], axis=1)

    cd = compute_dtype
    f32 = jnp.float32
    return (wf_s.astype(cd), wf_a.astype(cd), bf.astype(f32),
            w2p.astype(cd), b2p.astype(f32),
            w5p.astype(cd), b5p.astype(f32),
            wo.astype(cd), bo.astype(f32))


# ---------------------------------------------------------------------------
# Pure-JAX references for correctness checking.
# ---------------------------------------------------------------------------
def critic_forward_ref_prepared(x, u, prepared_params):
    """Mirror of the kernel math (same padding / fusion / bf16 casts)."""
    (wf_s, wf_a, bf, w2p, b2p, w5p, b5p, wo, bo) = prepared_params
    cd = wf_s.dtype
    f32 = jnp.float32
    h = (jnp.dot(x.astype(cd), wf_s, preferred_element_type=f32)
         + jnp.dot(u.astype(cd), wf_a, preferred_element_type=f32) + bf)
    h = jnp.maximum(h, 0.0)
    h1, h2 = h[:, :H1P], h[:, H1P:]
    g1 = jnp.maximum(jnp.dot(h1.astype(cd), w2p, preferred_element_type=f32) + b2p, 0.0)
    g2 = jnp.maximum(jnp.dot(h2.astype(cd), w5p, preferred_element_type=f32) + b5p, 0.0)
    g = jnp.concatenate([g1, g2], axis=1)
    q = jnp.dot(g.astype(cd), wo, preferred_element_type=f32) + bo
    return q[:, 0:1], q[:, 1:2]


def critic_forward_ref_fp32(x, u, raw_params):
    """Exact fp32 math of the original PyTorch module."""
    (w1, b1, w2, b2, w3, b3, w4, b4, w5, b5, w6, b6) = raw_params
    xu = jnp.concatenate([x, u], axis=1)
    h1 = jnp.maximum(xu @ w1 + b1, 0.0)
    h1 = jnp.maximum(h1 @ w2 + b2, 0.0)
    q1 = h1 @ w3 + b3
    h2 = jnp.maximum(xu @ w4 + b4, 0.0)
    h2 = jnp.maximum(h2 @ w5 + b5, 0.0)
    q2 = h2 @ w6 + b6
    return q1, q2


if __name__ == "__main__":
    key = jax.random.PRNGKey(0)
    B, state_dim, action_dim = 2, 8, 4

    key, kx, ku, kp = jax.random.split(key, 4)
    x = jax.random.normal(kx, (B, state_dim), jnp.float32)
    u = jax.random.normal(ku, (B, action_dim), jnp.float32)

    raw = init_critic_params(kp, state_dim, action_dim)
    prepared = prepare_critic_params(raw, state_dim, action_dim)

    q1, q2 = critic_forward(x, u, prepared)
    jax.block_until_ready((q1, q2))
    assert q1.shape == (B, 1) and q2.shape == (B, 1)

    # Tight check vs. a pure-JAX mirror of the kernel math (same bf16 casts).
    r1, r2 = critic_forward_ref_prepared(x, u, prepared)
    assert jnp.allclose(q1, r1, atol=1e-3, rtol=1e-3)
    assert jnp.allclose(q2, r2, atol=1e-3, rtol=1e-3)

    # Loose check vs. the original fp32 (PyTorch-equivalent) semantics; the
    # only difference is bf16 matmul operands with fp32 accumulation.
    f1, f2 = critic_forward_ref_fp32(x, u, raw)
    assert jnp.allclose(q1, f1, atol=5e-2, rtol=5e-2)
    assert jnp.allclose(q2, f2, atol=5e-2, rtol=5e-2)

    print("KERNEL_OK")
</pallas_src>

<mosaic_0001>
module attributes {stable_mosaic.version = 11 : i64} {
  func.func @_critic_kernel(%arg0: i32, %arg1: memref<8x8xf32, #tpu.memory_space<vmem>>, %arg2: memref<8x4xf32, #tpu.memory_space<vmem>>, %arg3: memref<8x1024xbf16, #tpu.memory_space<vmem>>, %arg4: memref<4x1024xbf16, #tpu.memory_space<vmem>>, %arg5: memref<1x1024xf32, #tpu.memory_space<vmem>>, %arg6: memref<512x384xbf16, #tpu.memory_space<vmem>>, %arg7: memref<1x384xf32, #tpu.memory_space<vmem>>, %arg8: memref<512x384xbf16, #tpu.memory_space<vmem>>, %arg9: memref<1x384xf32, #tpu.memory_space<vmem>>, %arg10: memref<768x2xbf16, #tpu.memory_space<vmem>>, %arg11: memref<1x2xf32, #tpu.memory_space<vmem>>, %arg12: memref<8x2xf32, #tpu.memory_space<vmem>>) attributes {dimension_semantics = [#tpu.dimension_semantics<parallel>], iteration_bounds = array<i64: 1>, scalar_prefetch = 0 : i64, scratch_operands = 0 : i64, tpu.core_type = #tpu.core_type<tc>, window_params = [{transform_indices = @transform_0, window_bounds = array<i64: 8, 8>}, {transform_indices = @transform_1, window_bounds = array<i64: 8, 4>}, {pipeline_mode = #tpu.pipeline_mode<synchronous>, transform_indices = @transform_2, window_bounds = array<i64: 8, 1024>}, {pipeline_mode = #tpu.pipeline_mode<synchronous>, transform_indices = @transform_3, window_bounds = array<i64: 4, 1024>}, {pipeline_mode = #tpu.pipeline_mode<synchronous>, transform_indices = @transform_4, window_bounds = array<i64: 1, 1024>}, {pipeline_mode = #tpu.pipeline_mode<synchronous>, transform_indices = @transform_5, window_bounds = array<i64: 512, 384>}, {pipeline_mode = #tpu.pipeline_mode<synchronous>, transform_indices = @transform_6, window_bounds = array<i64: 1, 384>}, {pipeline_mode = #tpu.pipeline_mode<synchronous>, transform_indices = @transform_7, window_bounds = array<i64: 512, 384>}, {pipeline_mode = #tpu.pipeline_mode<synchronous>, transform_indices = @transform_8, window_bounds = array<i64: 1, 384>}, {pipeline_mode = #tpu.pipeline_mode<synchronous>, transform_indices = @transform_9, window_bounds = array<i64: 768, 2>}, {pipeline_mode = #tpu.pipeline_mode<synchronous>, transform_indices = @transform_10, window_bounds = array<i64: 1, 2>}, {transform_indices = @transform_11, window_bounds = array<i64: 8, 2>}]} {
    %c0 = arith.constant 0 : index
    %c0_0 = arith.constant 0 : index
    %0 = vector.load %arg1[%c0, %c0_0] : memref<8x8xf32, #tpu.memory_space<vmem>>, vector<8x8xf32>
    %c0_1 = arith.constant 0 : index
    %c0_2 = arith.constant 0 : index
    %1 = vector.load %arg2[%c0_1, %c0_2] : memref<8x4xf32, #tpu.memory_space<vmem>>, vector<8x4xf32>
    %2 = arith.truncf %0 : vector<8x8xf32> to vector<8x8xbf16>
    %c0_3 = arith.constant 0 : index
    %c0_4 = arith.constant 0 : index
    %3 = vector.load %arg3[%c0_3, %c0_4] : memref<8x1024xbf16, #tpu.memory_space<vmem>>, vector<8x1024xbf16>
    %cst = arith.constant dense<0.000000e+00> : vector<8x1024xf32>
    %4 = tpu.matmul %2, %3, %cst {dimension_numbers = #tpu.dot_dimension_numbers<[1], [0], [0], [1], [0, 0, 1, 1], [], []>} : vector<8x8xbf16>, vector<8x1024xbf16>, vector<8x1024xf32> -> vector<8x1024xf32>
    %5 = arith.truncf %1 : vector<8x4xf32> to vector<8x4xbf16>
    %c0_5 = arith.constant 0 : index
    %c0_6 = arith.constant 0 : index
    %6 = vector.load %arg4[%c0_5, %c0_6] : memref<4x1024xbf16, #tpu.memory_space<vmem>>, vector<4x1024xbf16>
    %cst_7 = arith.constant dense<0.000000e+00> : vector<8x1024xf32>
    %7 = tpu.matmul %5, %6, %cst_7 {dimension_numbers = #tpu.dot_dimension_numbers<[1], [0], [0], [1], [0, 0, 1, 1], [], []>} : vector<8x4xbf16>, vector<4x1024xbf16>, vector<8x1024xf32> -> vector<8x1024xf32>
    %8 = arith.addf %4, %7 : vector<8x1024xf32>
    %c0_8 = arith.constant 0 : index
    %c0_9 = arith.constant 0 : index
    %9 = vector.load %arg5[%c0_8, %c0_9] : memref<1x1024xf32, #tpu.memory_space<vmem>>, vector<1x1024xf32>
    %10 = vector.broadcast %9 : vector<1x1024xf32> to vector<8x1024xf32>
    %11 = arith.addf %8, %10 : vector<8x1024xf32>
    %cst_10 = arith.constant 0.000000e+00 : f32
    %12 = vector.broadcast %cst_10 : f32 to vector<8x1024xf32>
    %13 = arith.maximumf %11, %12 : vector<8x1024xf32>
    %14 = vector.extract_strided_slice %13 {offsets = [0, 0], sizes = [8, 512], strides = [1, 1]} : vector<8x1024xf32> to vector<8x512xf32>
    %15 = vector.extract_strided_slice %13 {offsets = [0, 512], sizes = [8, 512], strides = [1, 1]} : vector<8x1024xf32> to vector<8x512xf32>
    %16 = arith.truncf %14 : vector<8x512xf32> to vector<8x512xbf16>
    %c0_11 = arith.constant 0 : index
    %c0_12 = arith.constant 0 : index
    %17 = vector.load %arg6[%c0_11, %c0_12] : memref<512x384xbf16, #tpu.memory_space<vmem>>, vector<512x384xbf16>
    %cst_13 = arith.constant dense<0.000000e+00> : vector<8x384xf32>
    %18 = tpu.matmul %16, %17, %cst_13 {dimension_numbers = #tpu.dot_dimension_numbers<[1], [0], [0], [1], [0, 0, 1, 1], [], []>} : vector<8x512xbf16>, vector<512x384xbf16>, vector<8x384xf32> -> vector<8x384xf32>
    %c0_14 = arith.constant 0 : index
    %c0_15 = arith.constant 0 : index
    %19 = vector.load %arg7[%c0_14, %c0_15] : memref<1x384xf32, #tpu.memory_space<vmem>>, vector<1x384xf32>
    %20 = vector.broadcast %19 : vector<1x384xf32> to vector<8x384xf32>
    %21 = arith.addf %18, %20 : vector<8x384xf32>
    %cst_16 = arith.constant 0.000000e+00 : f32
    %22 = vector.broadcast %cst_16 : f32 to vector<8x384xf32>
    %23 = arith.maximumf %21, %22 : vector<8x384xf32>
    %24 = arith.truncf %15 : vector<8x512xf32> to vector<8x512xbf16>
    %c0_17 = arith.constant 0 : index
    %c0_18 = arith.constant 0 : index
    %25 = vector.load %arg8[%c0_17, %c0_18] : memref<512x384xbf16, #tpu.memory_space<vmem>>, vector<512x384xbf16>
    %cst_19 = arith.constant dense<0.000000e+00> : vector<8x384xf32>
    %26 = tpu.matmul %24, %25, %cst_19 {dimension_numbers = #tpu.dot_dimension_numbers<[1], [0], [0], [1], [0, 0, 1, 1], [], []>} : vector<8x512xbf16>, vector<512x384xbf16>, vector<8x384xf32> -> vector<8x384xf32>
    %c0_20 = arith.constant 0 : index
    %c0_21 = arith.constant 0 : index
    %27 = vector.load %arg9[%c0_20, %c0_21] : memref<1x384xf32, #tpu.memory_space<vmem>>, vector<1x384xf32>
    %28 = vector.broadcast %27 : vector<1x384xf32> to vector<8x384xf32>
    %29 = arith.addf %26, %28 : vector<8x384xf32>
    %cst_22 = arith.constant 0.000000e+00 : f32
    %30 = vector.broadcast %cst_22 : f32 to vector<8x384xf32>
    %31 = arith.maximumf %29, %30 : vector<8x384xf32>
    %32 = tpu.concatenate %23, %31 in 1 : vector<8x384xf32>, vector<8x384xf32> -> vector<8x768xf32>
    %33 = arith.truncf %32 : vector<8x768xf32> to vector<8x768xbf16>
    %c0_23 = arith.constant 0 : index
    %c0_24 = arith.constant 0 : index
    %34 = vector.load %arg10[%c0_23, %c0_24] : memref<768x2xbf16, #tpu.memory_space<vmem>>, vector<768x2xbf16>
    %cst_25 = arith.constant dense<0.000000e+00> : vector<8x2xf32>
    %35 = tpu.matmul %33, %34, %cst_25 {dimension_numbers = #tpu.dot_dimension_numbers<[1], [0], [0], [1], [0, 0, 1, 1], [], []>} : vector<8x768xbf16>, vector<768x2xbf16>, vector<8x2xf32> -> vector<8x2xf32>
    %c0_26 = arith.constant 0 : index
    %c0_27 = arith.constant 0 : index
    %36 = vector.load %arg11[%c0_26, %c0_27] : memref<1x2xf32, #tpu.memory_space<vmem>>, vector<1x2xf32>
    %37 = vector.broadcast %36 : vector<1x2xf32> to vector<8x2xf32>
    %38 = arith.addf %35, %37 : vector<8x2xf32>
    %c0_28 = arith.constant 0 : index
    %c0_29 = arith.constant 0 : index
    %39 = vector.load %arg12[%c0_28, %c0_29] : memref<8x2xf32, #tpu.memory_space<vmem>>, vector<8x2xf32>
    tpu.vector_store %arg12[%c0_28, %c0_29], %38 {strides = array<i32>} : memref<8x2xf32, #tpu.memory_space<vmem>>, vector<8x2xf32>,
    return
  }
  func.func @transform_0(%arg0: i32) -> (i32, i32) {
    %c0_i32 = arith.constant 0 : i32
    %c0_i32_0 = arith.constant 0 : i32
    return %arg0, %c0_i32 : i32, i32
  }
  func.func @transform_1(%arg0: i32) -> (i32, i32) {
    %c0_i32 = arith.constant 0 : i32
    %c0_i32_0 = arith.constant 0 : i32
    return %arg0, %c0_i32 : i32, i32
  }
  func.func @transform_2(%arg0: i32) -> (i32, i32) {
    %c0_i32 = arith.constant 0 : i32
    %c0_i32_0 = arith.constant 0 : i32
    %c0_i32_1 = arith.constant 0 : i32
    return %c0_i32, %c0_i32_0 : i32, i32
  }
  func.func @transform_3(%arg0: i32) -> (i32, i32) {
    %c0_i32 = arith.constant 0 : i32
    %c0_i32_0 = arith.constant 0 : i32
    %c0_i32_1 = arith.constant 0 : i32
    return %c0_i32, %c0_i32_0 : i32, i32
  }
  func.func @transform_4(%arg0: i32) -> (i32, i32) {
    %c0_i32 = arith.constant 0 : i32
    %c0_i32_0 = arith.constant 0 : i32
    %c0_i32_1 = arith.constant 0 : i32
    return %c0_i32, %c0_i32_0 : i32, i32
  }
  func.func @transform_5(%arg0: i32) -> (i32, i32) {
    %c0_i32 = arith.constant 0 : i32
    %c0_i32_0 = arith.constant 0 : i32
    %c0_i32_1 = arith.constant 0 : i32
    return %c0_i32, %c0_i32_0 : i32, i32
  }
  func.func @transform_6(%arg0: i32) -> (i32, i32) {
    %c0_i32 = arith.constant 0 : i32
    %c0_i32_0 = arith.constant 0 : i32
    %c0_i32_1 = arith.constant 0 : i32
    return %c0_i32, %c0_i32_0 : i32, i32
  }
  func.func @transform_7(%arg0: i32) -> (i32, i32) {
    %c0_i32 = arith.constant 0 : i32
    %c0_i32_0 = arith.constant 0 : i32
    %c0_i32_1 = arith.constant 0 : i32
    return %c0_i32, %c0_i32_0 : i32, i32
  }
  func.func @transform_8(%arg0: i32) -> (i32, i32) {
    %c0_i32 = arith.constant 0 : i32
    %c0_i32_0 = arith.constant 0 : i32
    %c0_i32_1 = arith.constant 0 : i32
    return %c0_i32, %c0_i32_0 : i32, i32
  }
  func.func @transform_9(%arg0: i32) -> (i32, i32) {
    %c0_i32 = arith.constant 0 : i32
    %c0_i32_0 = arith.constant 0 : i32
    %c0_i32_1 = arith.constant 0 : i32
    return %c0_i32, %c0_i32_0 : i32, i32
  }
  func.func @transform_10(%arg0: i32) -> (i32, i32) {
    %c0_i32 = arith.constant 0 : i32
    %c0_i32_0 = arith.constant 0 : i32
    %c0_i32_1 = arith.constant 0 : i32
    return %c0_i32, %c0_i32_0 : i32, i32
  }
  func.func @transform_11(%arg0: i32) -> (i32, i32) {
    %c0_i32 = arith.constant 0 : i32
    %c0_i32_0 = arith.constant 0 : i32
    return %arg0, %c0_i32 : i32, i32
  }
}

</mosaic_0001>

<bundles_post_ra>
// kernel: tpu_custom_call.1
= control target key start
LH: loop header
LB: loop body
LE: loop exit
PB: predicated region body
PF: predicated region fallthrough
CT: control target
= control target key end

     0   :  { %16 = vsyncpa [#allocation3], 0  ;;  %s3932_s0 = inlined_call_operand.vmem [shape: f32[8,8], index: 0, kind: input, shape index: {}]   ;;  %s3933_s1 = inlined_call_operand.vmem [shape: f32[8,4], index: 1, kind: input, shape index: {}]   ;;  %s3934_s2 = inlined_call_operand.vmem [shape: bf16[8,1024], index: 2, kind: input, shape index: {}]   ;;  %s3935_s3 = inlined_call_operand.vmem [shape: bf16[4,1024], index: 3, kind: input, shape index: {}]   ;;  %s3936_s4 = inlined_call_operand.vmem [shape: f32[1,1024], index: 4, kind: input, shape index: {}]   ;;  %s3937_s5 = inlined_call_operand.hbm [shape: bf16[512,384], index: 5, kind: input, shape index: {}]   ;;  %s3938_s6 = inlined_call_operand.vmem [shape: f32[1,384], index: 6, kind: input, shape index: {}]   ;;  %s3939_s7 = inlined_call_operand.hbm [shape: bf16[512,384], index: 7, kind: input, shape index: {}]   ;;  %s3940_s8 = inlined_call_operand.vmem [shape: f32[1,384], index: 8, kind: input, shape index: {}]   ;;  %s3941_s9 = inlined_call_operand.vmem [shape: bf16[768,2], index: 9, kind: input, shape index: {}]   ;;  %s3942_s10 = inlined_call_operand.vmem [shape: f32[1,2], index: 10, kind: input, shape index: {}]   ;;  %s3943_s11 = inlined_call_operand.vmem [shape: f32[8,2], index: 11, kind: output, shape index: {}]  }
   0x1   :  { %17 = vsyncpa [#allocation5], 0  ;;  %s3553_s17 = smov [#allocation2]   ;;  %s3505_s21 = scalar_lea.hbm %s3937_s5, 12288 }
   0x2   :  { %s33_s18 = sshll.u32 %s3553_s17, 4  ;;  %p3506_p0 = scmp.ne.s32.totalorder %s3937_s5, %s3505_s21  ;;  %s34_s18 = int_to_ptr.vmem [resolvable:$true] %s33_s18 }
   0x3   :  { %p3509_p1 = scmp.lt.u32.totalorder %s3505_s21, %s3937_s5 }
   0x5   :  { %p3511_p2 = pnand %p3509_p1, %p3506_p0 }
   0x7   :  { %3514 = shalt.err (!%p3511_p2)
}
   0x8   :  { %s3515_s26 = scalar_lea.vmem %s34_s18, 12288  ;;  %p3520_p4 = scmp.lt.s32.totalorder %s34_s18, %s34_s18 }
   0x9   :  { %p3516_p3 = scmp.ne.s32.totalorder %s34_s18, %s3515_s26  ;;  %p3521_p5 = scmp.lt.s32.totalorder %s3515_s26, %s3515_s26 }
   0xb   :  { %p3522_p6 = por %p3521_p5, %p3520_p4 }
   0xd   :  { %p3523_p7 = pnand %p3522_p6, %p3516_p3 }
   0xf   :  { %3526 = shalt.err (!%p3523_p7)
}
  0x10   :  { %s3554_s27 = smov 192   ;;  %s3555_s28 = smov 12  }
  0x11   :  { %39 = dma.hbm_to_vmem [thread:$0]  %s3937_s5, 12288, %s34_s18, [#allocation3], %s3554_s27, %s3554_s27, %s3555_s28  }
  0x12   :  { %s3556_s12 = smov [#allocation4]   ;;  %s3527_s16 = scalar_lea.hbm %s3939_s7, 12288 }
  0x13   :  { %s47_s13 = sshll.u32 %s3556_s12, 4  ;;  %p3528_p8 = scmp.ne.s32.totalorder %s3939_s7, %s3527_s16  ;;  %s48_s13 = int_to_ptr.vmem [resolvable:$true] %s47_s13 }
  0x14   :  { %p3531_p9 = scmp.lt.u32.totalorder %s3527_s16, %s3939_s7 }
  0x16   :  { %p3533_p10 = pnand %p3531_p9, %p3528_p8 }
  0x18   :  { %3536 = shalt.err (!%p3533_p10)
}
  0x19   :  { %s3537_s22 = scalar_lea.vmem %s48_s13, 12288  ;;  %p3542_p12 = scmp.lt.s32.totalorder %s48_s13, %s48_s13 }
  0x1a   :  { %p3538_p11 = scmp.ne.s32.totalorder %s48_s13, %s3537_s22  ;;  %p3543_p13 = scmp.lt.s32.totalorder %s3537_s22, %s3537_s22 }
  0x1c   :  { %p3544_p0 = por %p3543_p13, %p3542_p12 }
  0x1e   :  { %p3545_p1 = pnand %p3544_p0, %p3538_p11 }
  0x20   :  { %3548 = shalt.err (!%p3545_p1)
}
  0x21   :  { %53 = dma.hbm_to_vmem [thread:$0]  %s3939_s7, 12288, %s48_s13, [#allocation5], %s3554_s27, %s3554_s27, %s3555_s28  }
  0x22   :  { %3549 = dma.done.wait [#allocation3], 12288  }
  0x23   :  { %3550 = vsyncadd [#allocation3], 4294955008 }
  0x24   :  { %3551 = dma.done.wait [#allocation5], 12288  }
  0x25   :  { %3552 = vsyncadd [#allocation5], 4294955008  ;;  %v83_v0 = vlaneseq  ;;  %v3557_v1 = vmov 1983009808   ;;  %v3558_v4 = vmov 0   ;;  %v70_v7 = vld [vmem:[%s3934_s2] sm:$0xff] }
  0x26   :  { %v81_v2 = vunpack.c.l.s4 %v3557_v1  ;;  %387 = vmatprep.mubr.bf16.mxu0 %v3558_v4  ;;  %174 = vmatprep.mubr.bf16.mxu1 %v3558_v4  ;;  %vm330_vm0 = vcmask 1043456   ;;  %v75_v8 = vld [vmem:[%s3935_s3] sm:$0xff]  ;;  %vm117_vm1 = vcmask 1041408   ;;  %v2763_v10 = vcombine.high %v70_v7, %v70_v7  ;;  %v76_v14 = vld [vmem:[%s3935_s3 + $0x8] sm:$0xff]  ;;  %v72_v15 = vld [vmem:[%s3934_s2 + $0x10] sm:$0xff] }
  0x27   :  { %v3643_v3 = vshrl.u32 %v83_v0, 7  ;;  %v67_v9 = vld [vmem:[%s3932_s0] sm:$0xff]  ;;  %v2762_v11 = vcombine.low %v70_v7, %v70_v7  ;;  %v79_v12 = vcombine.high %v75_v8, %v75_v8  ;;  %v2767_v19 = vcombine.high %v72_v15, %v72_v15  ;;  %v3206_v34 = vld [vmem:[#allocation2 + $0x1c] ss:$12 sps:$4 sm:$0xff]   ;;  %v3212_v41 = vld [vmem:[#allocation2 + $0x4c] ss:$12 sps:$4 sm:$0xff]  }
  0x28   :  { %v82_v5 = vunpack.c.0.s8 %v81_v2  ;;  %v3663_v16 = vpack.c.bf16 %v67_v9, %v67_v9  ;;  %v68_v17 = vld [vmem:[%s3933_s1] sm:$0xff]  ;;  %2770 = vmatprep.subr.msk.bf16.mxu0 %vm330_vm0, %v2763_v10  ;;  %vm326_vm2 = vcmask 64512   ;;  %v2766_v24 = vcombine.low %v72_v15, %v72_v15  ;;  %v71_v39 = vld [vmem:[%s3934_s2 + $0x8] sm:$0xff]  ;;  %v3207_v40 = vld [vmem:[#allocation2 + $0x30] ss:$12 sps:$4 sm:$0xff]  }
  0x29   :  { %v332_v20 = vsel %vm330_vm0, %v2762_v11, 0  ;;  %v74_v25 = vpack.c.bf16 %v68_v17, %v68_v17  ;;  %v3203_v27 = vld [vmem:[#allocation2 + $0x4] ss:$12 sps:$4 sm:$0xff]   ;;  %vm113_vm3 = vcmask 31744   ;;  %v96_v31 = vcombine.high %v76_v14, %v76_v14  ;;  %v3201_v33 = vld [vmem:[#allocation2] ss:$12 sps:$4 sm:$0xff]  }
  0x2a   :  { %v85_v6 = vsub.s32 %v82_v5, %v3643_v3  ;;  %356 = vmatpush1.bf16.msra.mxu0 %v332_v20  ;;  %v344_v28 = vsel %vm330_vm0, %v2766_v24, 0  ;;  %v3204_v37 = vld [vmem:[#allocation2 + $0x18] ss:$12 sps:$4 sm:$0xff]   ;;  %v3209_v38 = vld [vmem:[#allocation2 + $0x34] ss:$12 sps:$4 sm:$0xff]   ;;  %v2765_v43 = vcombine.high %v71_v39, %v71_v39  ;;  %v2764_v46 = vcombine.low %v71_v39, %v71_v39 }
  0x2b   :  { %2774 = vmatprep.subr.msk.bf16.mxu0 %vm330_vm0, %v2767_v19  ;;  %v3210_v44 = vld [vmem:[#allocation2 + $0x48] ss:$12 sps:$4 sm:$0xff]   ;;  %v3215_v45 = vld [vmem:[#allocation2 + $0x64] ss:$12 sps:$4 sm:$0xff]   ;;  %v73_v47 = vld [vmem:[%s3934_s2 + $0x18] sm:$0xff]  ;;  %vm2746_vm4 = vcmask 15360  }
  0x2c   :  { %v86_v13 = vrot.slane %v75_v8, %v85_v6  ;;  %v103_v18 = vrot.slane %v76_v14, %v85_v6  ;;  %v93_v21 = vrot.slane %v79_v12, %v85_v6  ;;  %v110_v32 = vrot.slane %v96_v31, %v85_v6  ;;  %v3213_v48 = vld [vmem:[#allocation2 + $0x60] ss:$12 sps:$4 sm:$0xff]   ;;  %v3218_v49 = vld [vmem:[#allocation2 + $0x7c] ss:$12 sps:$4 sm:$0xff]   ;;  %v3216_v51 = vld [vmem:[#allocation2 + $0x78] ss:$12 sps:$4 sm:$0xff]  }
  0x2d   :  { %2771 = vmatmul.mubr.msk.bf16.vlgmr.msra.gmra.mrb[0].mxu0 %vm326_vm2, %v3663_v16  ;;  %v338_v50 = vsel %vm330_vm0, %v2764_v46, 0  ;;  %v2769_v52 = vcombine.high %v73_v47, %v73_v47  ;;  %v3221_v53 = vld [vmem:[#allocation2 + $0x94] ss:$12 sps:$4 sm:$0xff]   ;;  %v2768_v54 = vcombine.low %v73_v47, %v73_v47  ;;  %v3219_v55 = vld [vmem:[#allocation2 + $0x90] ss:$12 sps:$4 sm:$0xff]  }
  0x2e   :  { %v94_v22 = vcombine.high %v86_v13, %v86_v13  ;;  %v119_v23 = vsel %vm117_vm1, %v86_v13, 0  ;;  %v95_v26 = vcombine.high %v93_v21, %v93_v21  ;;  %v125_v29 = vsel %vm117_vm1, %v93_v21, 0  ;;  %438 = vmatpush1.bf16.msra.mxu0 %v344_v28  ;;  %469 = vmatprep.mubr.bf16.mxu0 %v3558_v4  ;;  %v3224_v56 = vld [vmem:[#allocation2 + $0xac] ss:$12 sps:$4 sm:$0xff]   ;;  %v3228_v57 = vld [vmem:[#allocation2 + $0xc8] ss:$12 sps:$4 sm:$0xff]  }
  0x2f   :  { %v111_v30 = vcombine.high %v103_v18, %v103_v18  ;;  %1238 = vmatprep.subr.bf16.mxu0 %v3203_v27  ;;  %v131_v35 = vsel %vm117_vm1, %v103_v18, 0  ;;  %v112_v36 = vcombine.high %v110_v32, %v110_v32  ;;  %v137_v42 = vsel %vm117_vm1, %v110_v32, 0  ;;  %v3222_v59 = vld [vmem:[#allocation2 + $0xa8] ss:$12 sps:$4 sm:$0xff]   ;;  %v3227_v60 = vld [vmem:[#allocation2 + $0xc4] ss:$12 sps:$4 sm:$0xff]  }
  0x30   :  { %2754 = vmatprep.subr.msk.bf16.mxu1 %vm117_vm1, %v94_v22  ;;  %v350_v58 = vsel %vm330_vm0, %v2768_v54, 0  ;;  %v3225_v61 = vld [vmem:[#allocation2 + $0xc0] ss:$12 sps:$4 sm:$0xff]   ;;  %v3232_v62 = vld [vmem:[#allocation2 + $0xdc] ss:$12 sps:$4 sm:$0xff]   ;;  %v3717_v32 = vsub.s32 1, %v3643_v3 }
  0x31   :  { %143 = vmatpush1.bf16.msra.mxu1 %v119_v23  ;;  %v3229_v63 = vld [vmem:[#allocation2 + $0x8] ss:$12 sps:$4 sm:$0xff]   ;;  %v3233_v0 = vld [vmem:[#allocation2 + $0xe0] ss:$12 sps:$4 sm:$0xff]   ;;  %v3230_v1 = vld [vmem:[#allocation2 + $0xd8] ss:$12 sps:$4 sm:$0xff]  }
  0x32   :  { %2756 = vmatprep.subr.msk.bf16.mxu1 %vm117_vm1, %v95_v26  ;;  %v3237_v2 = vld [vmem:[#allocation2 + $0xf4] ss:$12 sps:$4 sm:$0xff]   ;;  %v3238_v6 = vld [vmem:[#allocation2 + $0xf8] ss:$12 sps:$4 sm:$0xff]   ;;  %v3235_v7 = vld [vmem:[#allocation2 + $0xf0] ss:$12 sps:$4 sm:$0xff]  }
  0x33   :  { %v3234_v5 = vld [vmem:[#allocation2 + $0x20] ss:$12 sps:$4 sm:$0xff]   ;;  %v3239_v8 = vld [vmem:[#allocation2 + $0x38] ss:$12 sps:$4 sm:$0xff]   ;;  %v3243_v9 = vld [vmem:[#allocation2 + $0x110] ss:$12 sps:$4 sm:$0xff]  }
  0x34   :  { %2755 = vmatmul.mubr.msk.bf16.vlgmr.msra.gmra.mrb[0].mxu1 %vm113_vm3, %v74_v25  ;;  %v3240_v10 = vld [vmem:[#allocation2 + $0x108] ss:$12 sps:$4 sm:$0xff]   ;;  %v3247_v11 = vld [vmem:[#allocation2 + $0x124] ss:$12 sps:$4 sm:$0xff]   ;;  %v3245_v14 = vld [vmem:[#allocation2 + $0x120] ss:$12 sps:$4 sm:$0xff]  }
  0x35   :  { %184 = vmatpush1.bf16.msra.mxu1 %v125_v29  ;;  %215 = vmatprep.mubr.bf16.mxu1 %v3558_v4  ;;  %v3244_v12 = vld [vmem:[#allocation2 + $0x50] ss:$12 sps:$4 sm:$0xff]   ;;  %v3248_v13 = vld [vmem:[#allocation2 + $0x128] ss:$12 sps:$4 sm:$0xff]   ;;  %v3253_v17 = vld [vmem:[#allocation2 + $0x140] ss:$12 sps:$4 sm:$0xff]  }
  0x36   :  { %2758 = vmatprep.subr.msk.bf16.mxu1 %vm117_vm1, %v111_v30  ;;  %2775 = vmatmul.mubr.msk.bf16.vlgmr.msra.gmra.mrb[4].mxu0 %vm326_vm2, %v3663_v16  ;;  %v3249_v15 = vld [vmem:[#allocation2 + $0x68] ss:$12 sps:$4 sm:$0xff]   ;;  %v3250_v18 = vld [vmem:[#allocation2 + $0x138] ss:$12 sps:$4 sm:$0xff]   ;;  %v3254_v19 = vld [vmem:[#allocation2 + $0x80] ss:$12 sps:$4 sm:$0xff]  }
  0x37   :  { %1239 = vmatpush1.bf16.msra.mxu0 %v3201_v33  ;;  %v3257_v20 = vld [vmem:[#allocation2 + $0x154] ss:$12 sps:$4 sm:$0xff]   ;;  %v3258_v21 = vld [vmem:[#allocation2 + $0x158] ss:$12 sps:$4 sm:$0xff]   ;;  %v3255_v22 = vld [vmem:[#allocation2 + $0x150] ss:$12 sps:$4 sm:$0xff]  }
  0x38   :  { %1240 = vmatprep.subr.bf16.mxu0 %v3206_v34  ;;  %v3259_v23 = vld [vmem:[#allocation2 + $0x98] ss:$12 sps:$4 sm:$0xff]   ;;  %v3260_v26 = vld [vmem:[#allocation2 + $0x168] ss:$12 sps:$4 sm:$0xff]   ;;  %v3264_v27 = vld [vmem:[#allocation2 + $0xb0] ss:$12 sps:$4 sm:$0xff]  }
  0x39   :  { %v3262_v24 = vld [vmem:[#allocation2 + $0x16c] ss:$12 sps:$4 sm:$0xff]   ;;  %v3267_v28 = vld [vmem:[#allocation2 + $0x184] ss:$12 sps:$4 sm:$0xff]   ;;  %v3268_v29 = vld [vmem:[#allocation2 + $0x248] ss:$12 sps:$4 sm:$0xff]  }
  0x3a   :  { %v3709_v30 = vsub.s32 0, %v3643_v3  ;;  %v3714_v31 = vld [vmem:[%s3936_s4] sm:$0xff]  ;;  %v3269_v54 = vld [vmem:[#allocation2 + $0x188] ss:$12 sps:$4 sm:$0xff]  }
  0x3b   :  { %1241 = vmatpush1.bf16.msra.mxu0 %v3204_v37 }
  0x3c   :  { %2757 = vmatmul.mubr.msk.bf16.vlgmr.msra.gmra.mrb[4].mxu1 %vm113_vm3, %v74_v25  ;;  %1242 = vmatprep.subr.bf16.mxu0 %v3209_v38  ;;  %v528_v38 = vrot.slane %v3714_v31, %v3717_v32 }
  0x3d   :  { %225 = vmatpush1.bf16.msra.mxu1 %v131_v35  ;;  %256 = vmatprep.mubr.bf16.mxu1 %v3558_v4  ;;  %v524_v35 = vrot.slane %v3714_v31, %v3709_v30 }
  0x3e   :  { %2760 = vmatprep.subr.msk.bf16.mxu1 %vm117_vm1, %v112_v36 }
  0x3f   :  { %1243 = vmatpush1.bf16.msra.mxu0 %v3207_v40 }
  0x40   :  { %1244 = vmatprep.subr.bf16.mxu0 %v3212_v41 }
  0x43   :  { %1245 = vmatpush1.bf16.msra.mxu0 %v3210_v44 }
  0x44   :  { %2759 = vmatmul.mubr.msk.bf16.vlgmr.msra.gmra.mrb[8].mxu1 %vm113_vm3, %v74_v25  ;;  %1246 = vmatprep.subr.bf16.mxu0 %v3215_v45 }
  0x45   :  { %266 = vmatpush1.bf16.msra.mxu1 %v137_v42  ;;  %297 = vmatprep.mubr.bf16.mxu1 %v3558_v4 }
  0x46   :  { %2772 = vmatprep.subr.msk.bf16.mxu1 %vm330_vm0, %v2765_v43 }
  0x47   :  { %1247 = vmatpush1.bf16.msra.mxu0 %v3213_v48 }
  0x48   :  { %1248 = vmatprep.subr.bf16.mxu0 %v3218_v49 }
  0x4b   :  { %1249 = vmatpush1.bf16.msra.mxu0 %v3216_v51 }
  0x4c   :  { %2761 = vmatmul.mubr.msk.bf16.vlgmr.msra.gmra.mrb[12].mxu1 %vm113_vm3, %v74_v25  ;;  %1250 = vmatprep.subr.bf16.mxu0 %v3221_v53  ;;  %v3263_v25 = vld [vmem:[#allocation2 + $0x170] ss:$12 sps:$4 sm:$0xff]   ;;  %v3265_v53 = vld [vmem:[#allocation2 + $0x180] ss:$12 sps:$4 sm:$0xff]  }
  0x4d   :  { %397 = vmatpush1.bf16.msra.mxu1 %v338_v50  ;;  %428 = vmatprep.mubr.bf16.mxu1 %v3558_v4 }
  0x4e   :  { %2776 = vmatprep.subr.msk.bf16.mxu1 %vm330_vm0, %v2769_v52 }
  0x4f   :  { %1251 = vmatpush1.bf16.msra.mxu0 %v3219_v55 }
  0x50   :  { %1252 = vmatprep.subr.bf16.mxu0 %v3224_v56 }
  0x53   :  { %1253 = vmatpush1.bf16.msra.mxu0 %v3222_v59  ;;  %v3273_v59 = vld [vmem:[#allocation2 + $0x260] ss:$12 sps:$4 sm:$0xff]  }
  0x54   :  { %2773 = vmatmul.mubr.msk.bf16.vlgmr.msra.gmra.mrb[16].mxu1 %vm326_vm2, %v3663_v16  ;;  %1254 = vmatprep.subr.bf16.mxu0 %v3227_v60 }
  0x55   :  { %479 = vmatpush1.bf16.msra.mxu1 %v350_v58  ;;  %510 = vmatprep.mubr.bf16.mxu1 %v3558_v4  ;;  %v3242_v4 = vld [vmem:[#allocation2 + $0x10c] ss:$12 sps:$4 sm:$0xff]   ;;  %v3272_v58 = vld [vmem:[#allocation2 + $0x19c] ss:$12 sps:$4 sm:$0xff]  }
  0x56   :  { %3019 = vmatprep.subr.bf16.mxu1 %v3228_v57 }
  0x57   :  { %1255 = vmatpush1.bf16.msra.mxu0 %v3225_v61 }
  0x58   :  { %1256 = vmatprep.subr.bf16.mxu0 %v3232_v62 }
  0x5b   :  { %1257 = vmatpush1.bf16.msra.mxu0 %v3230_v1  ;;  %v3274_v1 = vld [vmem:[#allocation2 + $0x1a0] ss:$12 sps:$4 sm:$0xff]  }
  0x5c   :  { %2777 = vmatmul.mubr.msk.bf16.vlgmr.msra.gmra.mrb[20].mxu1 %vm326_vm2, %v3663_v16  ;;  %1258 = vmatprep.subr.bf16.mxu0 %v3237_v2  ;;  %v3252_v16 = vld [vmem:[#allocation2 + $0x13c] ss:$12 sps:$4 sm:$0xff]   ;;  %v3277_v2 = vld [vmem:[#allocation2 + $0x1b4] ss:$12 sps:$4 sm:$0xff]  }
  0x5d   :  { %3020 = vmatpush3.bf16.msra.mxu1 %v3229_v63  ;;  %v539_v63 = vsub.s32 4, %v3643_v3 }
  0x5e   :  { %3021 = vmatprep.subr.bf16.mxu1 %v3233_v0  ;;  %v3270_v0 = vld [vmem:[#allocation2 + $0x198] ss:$12 sps:$4 sm:$0xff]  }
  0x5f   :  { %1259 = vmatpush1.bf16.msra.mxu0 %v3235_v7 }
  0x60   :  { %1260 = vmatprep.subr.bf16.mxu0 %v3242_v4  ;;  %v3275_v4 = vld [vmem:[#allocation2 + $0x1b0] ss:$12 sps:$4 sm:$0xff]  }
  0x61   :  { %3022 = vmatpush3.bf16.msra.mxu1 %v3234_v5  ;;  %v3278_v5 = vld [vmem:[#allocation2 + $0x278] ss:$12 sps:$4 sm:$0xff]  }
  0x62   :  { %3023 = vmatprep.subr.bf16.mxu1 %v3238_v6  ;;  %v540_v6 = vrot.slane %v3714_v31, %v539_v63 }
  0x63   :  { %1261 = vmatpush1.bf16.msra.mxu0 %v3240_v10 }
  0x64   :  { %1262 = vmatprep.subr.bf16.mxu0 %v3247_v11  ;;  %v3282_v11 = vld [vmem:[#allocation2 + $0x1cc] ss:$12 sps:$4 sm:$0xff]  }
  0x65   :  { %3024 = vmatpush3.bf16.msra.mxu1 %v3239_v8  ;;  %v3279_v8 = vld [vmem:[#allocation2 + $0x1b8] ss:$12 sps:$4 sm:$0xff]  }
  0x66   :  { %3025 = vmatprep.subr.bf16.mxu1 %v3243_v9 }
  0x67   :  { %1263 = vmatpush1.bf16.msra.mxu0 %v3245_v14 }
  0x68   :  { %1264 = vmatprep.subr.bf16.mxu0 %v3252_v16 }
  0x69   :  { %3026 = vmatpush3.bf16.msra.mxu1 %v3244_v12  ;;  %v3283_v12 = vld [vmem:[#allocation2 + $0x290] ss:$12 sps:$4 sm:$0xff]  }
  0x6a   :  { %3027 = vmatprep.subr.bf16.mxu1 %v3248_v13 }
  0x6b   :  { %1265 = vmatpush1.bf16.msra.mxu0 %v3250_v18  ;;  %v3284_v18 = vld [vmem:[#allocation2 + $0x1d0] ss:$12 sps:$4 sm:$0xff]  }
  0x6c   :  { %1266 = vmatprep.subr.bf16.mxu0 %v3257_v20  ;;  %v3288_v20 = vld [vmem:[#allocation2 + $0x2a8] ss:$12 sps:$4 sm:$0xff]  }
  0x6d   :  { %3028 = vmatpush3.bf16.msra.mxu1 %v3249_v15 }
  0x6e   :  { %3029 = vmatprep.subr.bf16.mxu1 %v3253_v17  ;;  %v3280_v17 = vld [vmem:[#allocation2 + $0x1c8] ss:$12 sps:$4 sm:$0xff]  }
  0x6f   :  { %1267 = vmatpush1.bf16.msra.mxu0 %v3255_v22  ;;  %v3285_v22 = vld [vmem:[#allocation2 + $0x1e0] ss:$12 sps:$4 sm:$0xff]  }
  0x70   :  { %1268 = vmatprep.subr.bf16.mxu0 %v3262_v24 }
  0x71   :  { %3030 = vmatpush3.bf16.msra.mxu1 %v3254_v19  ;;  %v3287_v19 = vld [vmem:[#allocation2 + $0x1e4] ss:$12 sps:$4 sm:$0xff]  }
  0x72   :  { %3031 = vmatprep.subr.bf16.mxu1 %v3258_v21 }
  0x73   :  { %1269 = vmatpush1.bf16.msra.mxu0 %v3260_v26  ;;  %v3293_v26 = vld [vmem:[#allocation2 + $0x2c0] ss:$12 sps:$4 sm:$0xff]  }
  0x74   :  { %1279 = vmatprep.subr.bf16.mxu0 %v3267_v28  ;;  %v543_v28 = vsub.s32 5, %v3643_v3 }
  0x75   :  { %3032 = vmatpush3.bf16.msra.mxu1 %v3259_v23  ;;  %v3289_v23 = vld [vmem:[#allocation2 + $0x1e8] ss:$12 sps:$4 sm:$0xff]  }
  0x76   :  { %3033 = vmatprep.subr.bf16.mxu1 %v3263_v25  ;;  %v3292_v25 = vld [vmem:[#allocation2 + $0x1fc] ss:$12 sps:$4 sm:$0xff]  }
  0x79   :  { %3034 = vmatpush3.bf16.msra.mxu1 %v3264_v27 }
  0x7a   :  { %3041 = vmatprep.subr.bf16.mxu1 %v3268_v29 }
 0x100   :  { %v389_v33 = vpop.f32.mrb[0].mxu0 }
 0x101   :  { %v391_v34 = vpop.f32.mrb[1].mxu0 }
 0x102   :  { %v393_v37 = vpop.f32.mrb[2].mxu0 }
 0x103   :  { %v394_v41 = vpop.f32.mrb[3].mxu0  ;;  %v3297_v37 = vld [vmem:[#allocation2 + $0x214] ss:$12 sps:$4 sm:$0xff]  }
 0x107   :  { %v176_v36 = vpop.f32.mrb[0].mxu1 }
 0x108   :  { %v390_v39 = vadd.f32 %v389_v33, %v176_v36  ;;  %v178_v40 = vpop.f32.mrb[1].mxu1  ;;  %v3737_v33 = vsub.s32 2, %v3643_v3  ;;  %v535_v36 = vsub.s32 3, %v3643_v3 }
 0x109   :  { %v392_v42 = vadd.f32 %v391_v34, %v178_v40  ;;  %v180_v43 = vpop.f32.mrb[2].mxu1  ;;  %v471_v49 = vpop.f32.mrb[4].mxu0  ;;  %v3290_v34 = vld [vmem:[#allocation2 + $0x1f8] ss:$12 sps:$4 sm:$0xff]  }
 0x10a   :  { %v561_v44 = vadd.f32 %v524_v35, %v390_v39  ;;  %v181_v45 = vpop.f32.mrb[3].mxu1  ;;  %v473_v50 = vpop.f32.mrb[5].mxu0  ;;  %v3294_v35 = vld [vmem:[#allocation2 + $0x200] ss:$12 sps:$4 sm:$0xff]   ;;  %v544_v39 = vrot.slane %v3714_v31, %v543_v28  ;;  %v532_v40 = vrot.slane %v3714_v31, %v3737_v33  ;;  %v3295_v43 = vld [vmem:[#allocation2 + $0x210] ss:$12 sps:$4 sm:$0xff]  }
 0x10b   :  { %v562_v46 = vadd.f32 %v528_v38, %v392_v42  ;;  %v475_v55 = vpop.f32.mrb[6].mxu0  ;;  %v3298_v38 = vld [vmem:[#allocation2 + $0x2d8] ss:$12 sps:$4 sm:$0xff]   ;;  %v536_v42 = vrot.slane %v3714_v31, %v535_v36  ;;  %v3340_v36 = vld [vmem:[#allocation4 + $0x7c] ss:$12 sps:$4 sm:$0xff]  }
 0x10c   :  { %v569_v47 = vmax.f32 %v561_v44, 0.0  ;;  %v476_v60 = vpop.f32.mrb[7].mxu0  ;;  %v3299_v44 = vld [vmem:[#allocation2 + $0x218] ss:$12 sps:$4 sm:$0xff]   ;;  %v547_v55 = vsub.s32 6, %v3643_v3 }
 0x10d   :  { %v570_v48 = vmax.f32 %v562_v46, 0.0  ;;  %v3334_v28 = vld [vmem:[#allocation4 + $0x64] ss:$12 sps:$4 sm:$0xff]  }
 0x10e   :  { %v577_v56 = vpack.c.bf16 %v569_v47, %v569_v47  ;;  %v3302_v47 = vld [vmem:[#allocation2 + $0x22c] ss:$12 sps:$4 sm:$0xff]  }
 0x10f   :  { %v578_v51 = vpack.c.bf16 %v570_v48, %v570_v48  ;;  %v3723_v52 = vpop.f32.mrb[4].mxu1  ;;  %v3303_v48 = vld [vmem:[#allocation2 + $0x2f0] ss:$12 sps:$4 sm:$0xff]  }
 0x110   :  { %v3725_v57 = vpop.f32.mrb[5].mxu1 }
 0x111   :  { %v221_v61 = vpop.f32.mrb[6].mxu1  ;;  %1270 = vmatprep.mubr.bf16.mxu0 %v578_v51  ;;  %1352 = vmatprep.mubr.bf16.mxu1 %v578_v51 }
 0x112   :  { %v222_v62 = vpop.f32.mrb[7].mxu1  ;;  %1271 = vmatmul.mubr.bf16.vlgmr.msra.gmra.mrb[8].mxu0 %v577_v56  ;;  %1353 = vmatmul.mubr.bf16.vlgmr.msra.gmra.mrb[24].mxu1 %v577_v56  ;;  %v3307_v61 = vld [vmem:[#allocation2 + $0x244] ss:$12 sps:$4 sm:$0xff]  }
 0x113   :  { %1280 = vmatpush1.bf16.msra.mxu0 %v3265_v53  ;;  %3042 = vmatpush3.bf16.msra.mxu1 %v3269_v54  ;;  %v3310_v62 = vld [vmem:[#allocation4 + $0x4] ss:$12 sps:$4 sm:$0xff]  }
 0x114   :  { %1281 = vmatprep.subr.bf16.mxu0 %v3272_v58  ;;  %3043 = vmatprep.subr.bf16.mxu1 %v3273_v59  ;;  %v3300_v58 = vld [vmem:[#allocation2 + $0x228] ss:$12 sps:$4 sm:$0xff]   ;;  %v3304_v59 = vld [vmem:[#allocation2 + $0x230] ss:$12 sps:$4 sm:$0xff]  }
 0x117   :  { %1282 = vmatpush1.bf16.msra.mxu0 %v3270_v0  ;;  %3044 = vmatpush3.bf16.msra.mxu1 %v3274_v1  ;;  %v258_v7 = vpop.f32.mrb[8].mxu1  ;;  %v548_v0 = vrot.slane %v3714_v31, %v547_v55  ;;  %v3362_v55 = vld [vmem:[#allocation4 + $0x20] ss:$12 sps:$4 sm:$0xff]  }
 0x118   :  { %v472_v9 = vadd.f32 %v471_v49, %v258_v7  ;;  %v260_v10 = vpop.f32.mrb[9].mxu1  ;;  %1283 = vmatprep.subr.bf16.mxu0 %v3277_v2  ;;  %3045 = vmatprep.subr.bf16.mxu1 %v3278_v5  ;;  %v3308_v7 = vld [vmem:[#allocation4] ss:$12 sps:$4 sm:$0xff]  }
 0x119   :  { %v474_v13 = vadd.f32 %v473_v50, %v260_v10  ;;  %v262_v14 = vpop.f32.mrb[10].mxu1 }
 0x11a   :  { %v3729_v15 = vadd.f32 %v540_v6, %v472_v9  ;;  %v263_v16 = vpop.f32.mrb[11].mxu1  ;;  %v3305_v6 = vld [vmem:[#allocation2 + $0x240] ss:$12 sps:$4 sm:$0xff]   ;;  %v3313_v9 = vld [vmem:[#allocation2 + $0x25c] ss:$12 sps:$4 sm:$0xff]  }
 0x11b   :  { %1284 = vmatpush1.bf16.msra.mxu0 %v3275_v4  ;;  %3046 = vmatpush3.bf16.msra.mxu1 %v3279_v8  ;;  %v566_v51 = vadd.f32 %v544_v39, %v474_v13  ;;  %v3343_v39 = vld [vmem:[#allocation2 + $0x2d4] ss:$12 sps:$4 sm:$0xff]  }
 0x11c   :  { %1285 = vmatprep.subr.bf16.mxu0 %v3282_v11  ;;  %3047 = vmatprep.subr.bf16.mxu1 %v3283_v12  ;;  %v3316_v11 = vld [vmem:[#allocation4 + $0x1c] ss:$12 sps:$4 sm:$0xff]  }
 0x11f   :  { %1286 = vmatpush1.bf16.msra.mxu0 %v3280_v17  ;;  %3048 = vmatpush3.bf16.msra.mxu1 %v3284_v18  ;;  %v3731_v21 = vpop.f32.mrb[12].mxu1  ;;  %v3311_v17 = vld [vmem:[#allocation2 + $0x258] ss:$12 sps:$4 sm:$0xff]  }
 0x120   :  { %v3733_v24 = vpop.f32.mrb[13].mxu1  ;;  %1287 = vmatprep.subr.bf16.mxu0 %v3287_v19  ;;  %3049 = vmatprep.subr.bf16.mxu1 %v3288_v20  ;;  %v3314_v18 = vld [vmem:[#allocation4 + $0x18] ss:$12 sps:$4 sm:$0xff]   ;;  %v3319_v19 = vld [vmem:[#allocation2 + $0x274] ss:$12 sps:$4 sm:$0xff]  }
 0x121   :  { %v303_v27 = vpop.f32.mrb[14].mxu1  ;;  %v3322_v20 = vld [vmem:[#allocation4 + $0x34] ss:$12 sps:$4 sm:$0xff]  }
 0x122   :  { %v304_v29 = vpop.f32.mrb[15].mxu1  ;;  %v3331_v27 = vld [vmem:[#allocation2 + $0x2a4] ss:$12 sps:$4 sm:$0xff]  }
 0x123   :  { %1288 = vmatpush1.bf16.msra.mxu0 %v3285_v22  ;;  %3050 = vmatpush3.bf16.msra.mxu1 %v3289_v23  ;;  %v3320_v22 = vld [vmem:[#allocation4 + $0x30] ss:$12 sps:$4 sm:$0xff]   ;;  %v3325_v23 = vld [vmem:[#allocation2 + $0x28c] ss:$12 sps:$4 sm:$0xff]  }
 0x124   :  { %1289 = vmatprep.subr.bf16.mxu0 %v3292_v25  ;;  %3051 = vmatprep.subr.bf16.mxu1 %v3293_v26  ;;  %v3323_v25 = vld [vmem:[#allocation2 + $0x288] ss:$12 sps:$4 sm:$0xff]   ;;  %v3329_v29 = vld [vmem:[#allocation2 + $0x2a0] ss:$12 sps:$4 sm:$0xff]  }
 0x125   :  { %v3326_v26 = vld [vmem:[#allocation4 + $0x48] ss:$12 sps:$4 sm:$0xff]  }
 0x127   :  { %1290 = vmatpush1.bf16.msra.mxu0 %v3290_v34  ;;  %3052 = vmatpush3.bf16.msra.mxu1 %v3294_v35  ;;  %v430_v41 = vpop.f32.mrb[16].mxu1  ;;  %v3332_v34 = vld [vmem:[#allocation4 + $0x60] ss:$12 sps:$4 sm:$0xff]   ;;  %v3337_v35 = vld [vmem:[#allocation2 + $0x2bc] ss:$12 sps:$4 sm:$0xff]  }
 0x128   :  { %v431_v45 = vadd.f32 %v430_v41, %v3723_v52  ;;  %v432_v46 = vpop.f32.mrb[17].mxu1  ;;  %1291 = vmatprep.subr.bf16.mxu0 %v3297_v37  ;;  %3053 = vmatprep.subr.bf16.mxu1 %v3298_v38  ;;  %v551_v52 = vsub.s32 7, %v3643_v3  ;;  %v3335_v37 = vld [vmem:[#allocation2 + $0x2b8] ss:$12 sps:$4 sm:$0xff]   ;;  %v3341_v41 = vld [vmem:[#allocation2 + $0x2d0] ss:$12 sps:$4 sm:$0xff]  }
 0x129   :  { %v433_v49 = vadd.f32 %v432_v46, %v3725_v57  ;;  %v434_v50 = vpop.f32.mrb[18].mxu1  ;;  %v574_v57 = vmax.f32 %v566_v51, 0.0  ;;  %v3338_v38 = vld [vmem:[#allocation4 + $0x78] ss:$12 sps:$4 sm:$0xff]   ;;  %v3350_v46 = vld [vmem:[#allocation4 + $0xa8] ss:$12 sps:$4 sm:$0xff]  }
 0x12a   :  { %v563_v53 = vadd.f32 %v532_v40, %v431_v45  ;;  %v435_v54 = vpop.f32.mrb[19].mxu1  ;;  %v552_v5 = vrot.slane %v3714_v31, %v551_v52  ;;  %v3346_v40 = vld [vmem:[#allocation4 + $0x94] ss:$12 sps:$4 sm:$0xff]   ;;  %v3360_v51 = vld [vmem:[#allocation4 + $0xdc] ss:$12 sps:$4 sm:$0xff]  }
 0x12b   :  { %v564_v56 = vadd.f32 %v536_v42, %v433_v49  ;;  %1292 = vmatpush1.bf16.msra.mxu0 %v3295_v43  ;;  %3054 = vmatpush3.bf16.msra.mxu1 %v3299_v44  ;;  %v3754_v13 = vpack.c.bf16 %v574_v57, %v574_v57  ;;  %v3344_v42 = vld [vmem:[#allocation4 + $0x90] ss:$12 sps:$4 sm:$0xff]   ;;  %v3349_v43 = vld [vmem:[#allocation2 + $0x2ec] ss:$12 sps:$4 sm:$0xff]   ;;  %v3347_v45 = vld [vmem:[#allocation2 + $0x2e8] ss:$12 sps:$4 sm:$0xff]  }
 0x12c   :  { %v571_v60 = vmax.f32 %v563_v53, 0.0  ;;  %1293 = vmatprep.subr.bf16.mxu0 %v3302_v47  ;;  %3055 = vmatprep.subr.bf16.mxu1 %v3303_v48  ;;  %v3352_v44 = vld [vmem:[#allocation4 + $0xac] ss:$12 sps:$4 sm:$0xff]   ;;  %v3355_v47 = vld [vmem:[#allocation4 + $0xc4] ss:$12 sps:$4 sm:$0xff]  }
 0x12d   :  { %v572_v63 = vmax.f32 %v564_v56, 0.0  ;;  %v3356_v48 = vld [vmem:[#allocation4 + $0xc8] ss:$12 sps:$4 sm:$0xff]   ;;  %v3353_v49 = vld [vmem:[#allocation4 + $0xc0] ss:$12 sps:$4 sm:$0xff]  }
 0x12e   :  { %v3750_v4 = vpack.c.bf16 %v571_v60, %v571_v60  ;;  %v3357_v50 = vld [vmem:[#allocation4 + $0x8] ss:$12 sps:$4 sm:$0xff]   ;;  %v3361_v53 = vld [vmem:[#allocation4 + $0xe0] ss:$12 sps:$4 sm:$0xff]   ;;  %v3358_v54 = vld [vmem:[#allocation4 + $0xd8] ss:$12 sps:$4 sm:$0xff]  }
 0x12f   :  { %v580_v1 = vpack.c.bf16 %v572_v63, %v572_v63  ;;  %1294 = vmatpush1.bf16.msra.mxu0 %v3300_v58  ;;  %3056 = vmatpush3.bf16.msra.mxu1 %v3304_v59  ;;  %v512_v2 = vpop.f32.mrb[20].mxu1  ;;  %v3365_v56 = vld [vmem:[#allocation4 + $0xf4] ss:$12 sps:$4 sm:$0xff]   ;;  %v3366_v58 = vld [vmem:[#allocation4 + $0xf8] ss:$12 sps:$4 sm:$0xff]  }
 0x130   :  { %v513_v3 = vadd.f32 %v512_v2, %v3731_v21  ;;  %v514_v8 = vpop.f32.mrb[21].mxu1  ;;  %1295 = vmatprep.subr.bf16.mxu0 %v3307_v61  ;;  %2064 = vmatprep.subr.bf16.mxu1 %v3310_v62  ;;  %v3317_v21 = vld [vmem:[#allocation2 + $0x270] ss:$12 sps:$4 sm:$0xff]   ;;  %v3367_v52 = vld [vmem:[#allocation4 + $0x38] ss:$12 sps:$4 sm:$0xff]  }
 0x131   :  { %v515_v10 = vadd.f32 %v514_v8, %v3733_v24  ;;  %1311 = vmatprep.mubr.bf16.mxu0 %v580_v1  ;;  %1392 = vmatprep.mubr.bf16.mxu1 %v580_v1  ;;  %v516_v12 = vpop.f32.mrb[22].mxu1  ;;  %v3328_v24 = vld [vmem:[#allocation4 + $0x4c] ss:$12 sps:$4 sm:$0xff]   ;;  %v3363_v59 = vld [vmem:[#allocation4 + $0xf0] ss:$12 sps:$4 sm:$0xff]  }
 0x132   :  { %v3756_v14 = vadd.f32 %v548_v0, %v513_v3  ;;  %1393 = vmatmul.mubr.bf16.vlgmr.msra.gmra.mrb[28].mxu1 %v3750_v4  ;;  %v517_v31 = vpop.f32.mrb[23].mxu1  ;;  %v3370_v60 = vld [vmem:[#allocation4 + $0x10c] ss:$12 sps:$4 sm:$0xff]   ;;  %v3371_v61 = vld [vmem:[#allocation4 + $0x110] ss:$12 sps:$4 sm:$0xff]  }
 0x133   :  { %v3759_v16 = vadd.f32 %v552_v5, %v515_v10  ;;  %1296 = vmatpush1.bf16.msra.mxu0 %v3305_v6  ;;  %2065 = vmatpush1.bf16.msra.mxu1 %v3308_v7  ;;  %v3368_v62 = vld [vmem:[#allocation4 + $0x108] ss:$12 sps:$4 sm:$0xff]   ;;  %v3372_v63 = vld [vmem:[#allocation4 + $0x50] ss:$12 sps:$4 sm:$0xff]   ;;  %v3373_v1 = vld [vmem:[#allocation4 + $0x120] ss:$12 sps:$4 sm:$0xff]  }
 0x134   :  { %2096 = vmatprep.mubr.bf16.mxu1 %v3754_v13  ;;  %1297 = vmatprep.subr.bf16.mxu0 %v3313_v9  ;;  %v3375_v57 = vld [vmem:[#allocation4 + $0x124] ss:$12 sps:$4 sm:$0xff]   ;;  %v3376_v0 = vld [vmem:[#allocation4 + $0x128] ss:$12 sps:$4 sm:$0xff]   ;;  %v3381_v6 = vld [vmem:[#allocation4 + $0x140] ss:$12 sps:$4 sm:$0xff]  }
 0x135   :  { %2066 = vmatprep.subr.bf16.mxu1 %v3316_v11  ;;  %v3377_v2 = vld [vmem:[#allocation4 + $0x68] ss:$12 sps:$4 sm:$0xff]   ;;  %v3378_v7 = vld [vmem:[#allocation4 + $0x138] ss:$12 sps:$4 sm:$0xff]   ;;  %v3383_v9 = vld [vmem:[#allocation4 + $0x150] ss:$12 sps:$4 sm:$0xff]  }
 0x136   :  { %v3380_v5 = vld [vmem:[#allocation4 + $0x13c] ss:$12 sps:$4 sm:$0xff]   ;;  %v3385_v3 = vld [vmem:[#allocation4 + $0x154] ss:$12 sps:$4 sm:$0xff]   ;;  %v3386_v8 = vld [vmem:[#allocation4 + $0x158] ss:$12 sps:$4 sm:$0xff]  }
 0x137   :  { %1298 = vmatpush1.bf16.msra.mxu0 %v3311_v17  ;;  %2067 = vmatpush1.bf16.msra.mxu1 %v3314_v18  ;;  %v3387_v10 = vld [vmem:[#allocation4 + $0x98] ss:$12 sps:$4 sm:$0xff]   ;;  %v3391_v12 = vld [vmem:[#allocation4 + $0x170] ss:$12 sps:$4 sm:$0xff]   ;;  %v573_v17 = vmax.f32 %v3729_v15, 0.0 }
 0x138   :  { %1299 = vmatprep.subr.bf16.mxu0 %v3319_v19  ;;  %2068 = vmatprep.subr.bf16.mxu1 %v3322_v20  ;;  %v3390_v11 = vld [vmem:[#allocation4 + $0x16c] ss:$12 sps:$4 sm:$0xff]   ;;  %v3392_v31 = vld [vmem:[#allocation4 + $0xb0] ss:$12 sps:$4 sm:$0xff]   ;;  %v3396_v19 = vld [vmem:[#allocation4 + $0x248] ss:$12 sps:$4 sm:$0xff]  }
 0x139   :  { %v3395_v18 = vld [vmem:[#allocation4 + $0x184] ss:$12 sps:$4 sm:$0xff]   ;;  %v576_v20 = vmax.f32 %v3759_v16, 0.0 }
 0x13a   :  { %v3398_v15 = vld [vmem:[#allocation4 + $0x198] ss:$12 sps:$4 sm:$0xff]  }
 0x13b   :  { %1300 = vmatpush1.bf16.msra.mxu0 %v3317_v21  ;;  %2069 = vmatpush1.bf16.msra.mxu1 %v3320_v22  ;;  %v3393_v21 = vld [vmem:[#allocation4 + $0x180] ss:$12 sps:$4 sm:$0xff]   ;;  %v1403_v22 = vpack.c.bf16 %v573_v17, %v573_v17  ;;  %v3406_v16 = vld [vmem:[#allocation4 + $0x278] ss:$12 sps:$4 sm:$0xff]  }
 0x13c   :  { %1301 = vmatprep.subr.bf16.mxu0 %v3325_v23  ;;  %2070 = vmatprep.subr.bf16.mxu1 %v3328_v24  ;;  %v3397_v23 = vld [vmem:[#allocation4 + $0x188] ss:$12 sps:$4 sm:$0xff]   ;;  %v1406_v24 = vpack.c.bf16 %v576_v20, %v576_v20  ;;  %v3451_v20 = vld [vmem:[#allocation4 + $0x2d0] ss:$12 sps:$4 sm:$0xff]  }
 0x13d   :  { %v3453_v17 = vld [vmem:[#allocation4 + $0x2d4] ss:$12 sps:$4 sm:$0xff]  }
 0x13f   :  { %1302 = vmatpush1.bf16.msra.mxu0 %v3323_v25  ;;  %2071 = vmatpush1.bf16.msra.mxu1 %v3326_v26  ;;  %v3400_v25 = vld [vmem:[#allocation4 + $0x19c] ss:$12 sps:$4 sm:$0xff]   ;;  %v3401_v26 = vld [vmem:[#allocation4 + $0x260] ss:$12 sps:$4 sm:$0xff]  }
 0x140   :  { %1303 = vmatprep.subr.bf16.mxu0 %v3331_v27  ;;  %2072 = vmatprep.subr.bf16.mxu1 %v3334_v28  ;;  %v3402_v27 = vld [vmem:[#allocation4 + $0x1a0] ss:$12 sps:$4 sm:$0xff]  }
 0x141   :  { %v3405_v28 = vld [vmem:[#allocation4 + $0x1b4] ss:$12 sps:$4 sm:$0xff]  }
 0x143   :  { %1304 = vmatpush1.bf16.msra.mxu0 %v3329_v29  ;;  %2073 = vmatpush1.bf16.msra.mxu1 %v3332_v34  ;;  %v3403_v29 = vld [vmem:[#allocation4 + $0x1b0] ss:$12 sps:$4 sm:$0xff]   ;;  %v3407_v34 = vld [vmem:[#allocation4 + $0x1b8] ss:$12 sps:$4 sm:$0xff]  }
 0x144   :  { %1305 = vmatprep.subr.bf16.mxu0 %v3337_v35  ;;  %2074 = vmatprep.subr.bf16.mxu1 %v3340_v36  ;;  %v3410_v35 = vld [vmem:[#allocation4 + $0x1cc] ss:$12 sps:$4 sm:$0xff]   ;;  %v3411_v36 = vld [vmem:[#allocation4 + $0x290] ss:$12 sps:$4 sm:$0xff]  }
 0x147   :  { %1306 = vmatpush1.bf16.msra.mxu0 %v3335_v37  ;;  %2075 = vmatpush1.bf16.msra.mxu1 %v3338_v38  ;;  %v3408_v37 = vld [vmem:[#allocation4 + $0x1c8] ss:$12 sps:$4 sm:$0xff]   ;;  %v3412_v38 = vld [vmem:[#allocation4 + $0x1d0] ss:$12 sps:$4 sm:$0xff]  }
 0x148   :  { %1307 = vmatprep.subr.bf16.mxu0 %v3343_v39  ;;  %2076 = vmatprep.subr.bf16.mxu1 %v3346_v40  ;;  %v3415_v39 = vld [vmem:[#allocation4 + $0x1e4] ss:$12 sps:$4 sm:$0xff]   ;;  %v3416_v40 = vld [vmem:[#allocation4 + $0x2a8] ss:$12 sps:$4 sm:$0xff]  }
 0x14b   :  { %1308 = vmatpush1.bf16.msra.mxu0 %v3341_v41  ;;  %2077 = vmatpush1.bf16.msra.mxu1 %v3344_v42  ;;  %v3413_v41 = vld [vmem:[#allocation4 + $0x1e0] ss:$12 sps:$4 sm:$0xff]   ;;  %v3417_v42 = vld [vmem:[#allocation4 + $0x1e8] ss:$12 sps:$4 sm:$0xff]  }
 0x14c   :  { %1309 = vmatprep.subr.bf16.mxu0 %v3349_v43  ;;  %2078 = vmatprep.subr.bf16.mxu1 %v3352_v44  ;;  %v3420_v43 = vld [vmem:[#allocation4 + $0x1fc] ss:$12 sps:$4 sm:$0xff]   ;;  %v3421_v44 = vld [vmem:[#allocation4 + $0x2c0] ss:$12 sps:$4 sm:$0xff]  }
 0x14f   :  { %1310 = vmatpush1.bf16.msra.mxu0 %v3347_v45  ;;  %2079 = vmatpush1.bf16.msra.mxu1 %v3350_v46  ;;  %v3418_v45 = vld [vmem:[#allocation4 + $0x1f8] ss:$12 sps:$4 sm:$0xff]   ;;  %v3422_v46 = vld [vmem:[#allocation4 + $0x200] ss:$12 sps:$4 sm:$0xff]  }
 0x150   :  { %2080 = vmatprep.subr.bf16.mxu1 %v3355_v47  ;;  %3063 = vmatprep.subr.bf16.mxu0 %v3356_v48  ;;  %v3425_v47 = vld [vmem:[#allocation4 + $0x214] ss:$12 sps:$4 sm:$0xff]   ;;  %v3426_v48 = vld [vmem:[#allocation4 + $0x2d8] ss:$12 sps:$4 sm:$0xff]  }
 0x152   :  { %1312 = vmatmul.mubr.bf16.vlgmr.msra.gmra.mrb[8].mxu0 %v3750_v4  ;;  %v3382_v4 = vld [vmem:[#allocation4 + $0x80] ss:$12 sps:$4 sm:$0xff]  }
 0x153   :  { %2081 = vmatpush1.bf16.msra.mxu1 %v3353_v49  ;;  %3064 = vmatpush3.bf16.msra.mxu0 %v3357_v50  ;;  %v3423_v49 = vld [vmem:[#allocation4 + $0x210] ss:$12 sps:$4 sm:$0xff]   ;;  %v3427_v50 = vld [vmem:[#allocation4 + $0x218] ss:$12 sps:$4 sm:$0xff]  }
 0x154   :  { %2178 = vmatprep.mubr.bf16.mxu0 %v3754_v13  ;;  %2082 = vmatprep.subr.bf16.mxu1 %v3360_v51  ;;  %v3388_v13 = vld [vmem:[#allocation4 + $0x168] ss:$12 sps:$4 sm:$0xff]   ;;  %v3430_v51 = vld [vmem:[#allocation4 + $0x22c] ss:$12 sps:$4 sm:$0xff]  }
 0x155   :  { %3065 = vmatprep.subr.bf16.mxu0 %v3361_v53  ;;  %v3431_v53 = vld [vmem:[#allocation4 + $0x2f0] ss:$12 sps:$4 sm:$0xff]  }
 0x157   :  { %2083 = vmatpush1.bf16.msra.mxu1 %v3358_v54  ;;  %3066 = vmatpush3.bf16.msra.mxu0 %v3362_v55  ;;  %v3428_v54 = vld [vmem:[#allocation4 + $0x228] ss:$12 sps:$4 sm:$0xff]   ;;  %v3432_v55 = vld [vmem:[#allocation4 + $0x230] ss:$12 sps:$4 sm:$0xff]  }
 0x158   :  { %2084 = vmatprep.subr.bf16.mxu1 %v3365_v56  ;;  %3067 = vmatprep.subr.bf16.mxu0 %v3366_v58  ;;  %v3435_v56 = vld [vmem:[#allocation4 + $0x244] ss:$12 sps:$4 sm:$0xff]   ;;  %v575_v58 = vmax.f32 %v3756_v14, 0.0  ;;  %v3459_v14 = vld [vmem:[%s3941_s9 + $0x48] sm:$0xff]  }
 0x15b   :  { %2085 = vmatpush1.bf16.msra.mxu1 %v3363_v59  ;;  %3068 = vmatpush3.bf16.msra.mxu0 %v3367_v52  ;;  %v3457_v59 = vld [vmem:[%s3941_s9 + $0x40] sm:$0xff]  }
 0x15c   :  { %2086 = vmatprep.subr.bf16.mxu1 %v3370_v60  ;;  %3069 = vmatprep.subr.bf16.mxu0 %v3371_v61  ;;  %v3433_v52 = vld [vmem:[#allocation4 + $0x240] ss:$12 sps:$4 sm:$0xff]   ;;  %v3438_v60 = vld [vmem:[#allocation4 + $0x25c] ss:$12 sps:$4 sm:$0xff]  }
 0x15d   :  { %v3458_v61 = vld [vmem:[%s3941_s9] sm:$0xff]  }
 0x15f   :  { %2087 = vmatpush1.bf16.msra.mxu1 %v3368_v62  ;;  %3070 = vmatpush3.bf16.msra.mxu0 %v3372_v63  ;;  %v1405_v62 = vpack.c.bf16 %v575_v58, %v575_v58  ;;  %v3436_v63 = vld [vmem:[#allocation4 + $0x258] ss:$12 sps:$4 sm:$0xff]  }
 0x160   :  { %2088 = vmatprep.subr.bf16.mxu1 %v3375_v57  ;;  %3071 = vmatprep.subr.bf16.mxu0 %v3376_v0  ;;  %v3441_v57 = vld [vmem:[#allocation4 + $0x274] ss:$12 sps:$4 sm:$0xff]   ;;  %v3460_v0 = vld [vmem:[%s3941_s9 + $0x8] sm:$0xff]   ;;  %v3501_v58 = vld [vmem:[%s3941_s9 + $0xf8] sm:$0xff]  }
 0x163   :  { %2089 = vmatpush1.bf16.msra.mxu1 %v3373_v1  ;;  %3072 = vmatpush3.bf16.msra.mxu0 %v3377_v2  ;;  %v3461_v1 = vld [vmem:[%s3941_s9 + $0x50] sm:$0xff]  }
 0x164   :  { %2090 = vmatprep.subr.bf16.mxu1 %v3380_v5  ;;  %3073 = vmatprep.subr.bf16.mxu0 %v3381_v6  ;;  %v3439_v2 = vld [vmem:[#allocation4 + $0x270] ss:$12 sps:$4 sm:$0xff]   ;;  %v3444_v5 = vld [vmem:[#allocation4 + $0x28c] ss:$12 sps:$4 sm:$0xff]  }
 0x165   :  { %v3462_v6 = vld [vmem:[%s3941_s9 + $0x10] sm:$0xff]  }
 0x167   :  { %2091 = vmatpush1.bf16.msra.mxu1 %v3378_v7  ;;  %3074 = vmatpush3.bf16.msra.mxu0 %v3382_v4  ;;  %v3463_v7 = vld [vmem:[%s3941_s9 + $0x58] sm:$0xff]   ;;  %v3442_v4 = vld [vmem:[#allocation4 + $0x288] ss:$12 sps:$4 sm:$0xff]  }
 0x168   :  { %2092 = vmatprep.subr.bf16.mxu1 %v3385_v3  ;;  %3075 = vmatprep.subr.bf16.mxu0 %v3386_v8  ;;  %v3447_v3 = vld [vmem:[#allocation4 + $0x2a4] ss:$12 sps:$4 sm:$0xff]   ;;  %v3464_v8 = vld [vmem:[%s3941_s9 + $0x18] sm:$0xff]  }
 0x16b   :  { %2093 = vmatpush1.bf16.msra.mxu1 %v3383_v9  ;;  %3076 = vmatpush3.bf16.msra.mxu0 %v3387_v10  ;;  %v3465_v9 = vld [vmem:[%s3941_s9 + $0x60] sm:$0xff]  }
 0x16c   :  { %2094 = vmatprep.subr.bf16.mxu1 %v3390_v11  ;;  %3077 = vmatprep.subr.bf16.mxu0 %v3391_v12  ;;  %v3445_v10 = vld [vmem:[#allocation4 + $0x2a0] ss:$12 sps:$4 sm:$0xff]   ;;  %v3450_v11 = vld [vmem:[#allocation4 + $0x2bc] ss:$12 sps:$4 sm:$0xff]  }
 0x16d   :  { %v3466_v12 = vld [vmem:[%s3941_s9 + $0x20] sm:$0xff]  }
 0x16f   :  { %2095 = vmatpush1.bf16.msra.mxu1 %v3388_v13  ;;  %3078 = vmatpush3.bf16.msra.mxu0 %v3392_v31  ;;  %v3467_v13 = vld [vmem:[%s3941_s9 + $0x68] sm:$0xff]   ;;  %v3448_v31 = vld [vmem:[#allocation4 + $0x2b8] ss:$12 sps:$4 sm:$0xff]  }
 0x170   :  { %2105 = vmatprep.subr.bf16.mxu1 %v3395_v18  ;;  %3085 = vmatprep.subr.bf16.mxu0 %v3396_v19  ;;  %v3468_v18 = vld [vmem:[%s3941_s9 + $0x28] sm:$0xff]   ;;  %v3469_v19 = vld [vmem:[%s3941_s9 + $0x70] sm:$0xff]  }
 0x172   :  { %2097 = vmatmul.mubr.bf16.vlgmr.msra.gmra.mrb[32].mxu1 %v1403_v22  ;;  %2179 = vmatmul.mubr.bf16.vlgmr.msra.gmra.mrb[12].mxu0 %v1403_v22  ;;  %v3470_v22 = vld [vmem:[%s3941_s9 + $0x30] sm:$0xff]  }
 0x173   :  { %2106 = vmatpush1.bf16.msra.mxu1 %v3393_v21  ;;  %2137 = vmatprep.mubr.bf16.mxu1 %v1406_v24  ;;  %v3456_v21 = vld [vmem:[#allocation4 + $0x2ec] ss:$12 sps:$4 sm:$0xff]  }
 0x174   :  { %3086 = vmatpush3.bf16.msra.mxu0 %v3397_v23  ;;  %2218 = vmatprep.mubr.bf16.mxu0 %v1406_v24  ;;  %v3471_v23 = vld [vmem:[%s3941_s9 + $0x78] sm:$0xff]   ;;  %v3454_v24 = vld [vmem:[#allocation4 + $0x2e8] ss:$12 sps:$4 sm:$0xff]  }
 0x175   :  { %2107 = vmatprep.subr.bf16.mxu1 %v3400_v25  ;;  %3087 = vmatprep.subr.bf16.mxu0 %v3401_v26  ;;  %v3472_v25 = vld [vmem:[%s3941_s9 + $0x38] sm:$0xff]   ;;  %v709_v26 = vld [vmem:[%s3938_s6] sm:$0x7] }
 0x177   :  { %2108 = vmatpush1.bf16.msra.mxu1 %v3398_v15 }
 0x178   :  { %3088 = vmatpush3.bf16.msra.mxu0 %v3402_v27  ;;  %2109 = vmatprep.subr.bf16.mxu1 %v3405_v28  ;;  %v722_v27 = vrot.slane %v709_v26, %v3737_v33 }
 0x179   :  { %3089 = vmatprep.subr.bf16.mxu0 %v3406_v16 }
 0x17b   :  { %2110 = vmatpush1.bf16.msra.mxu1 %v3403_v29 }
 0x17c   :  { %3090 = vmatpush3.bf16.msra.mxu0 %v3407_v34  ;;  %2111 = vmatprep.subr.bf16.mxu1 %v3410_v35 }
 0x17d   :  { %3091 = vmatprep.subr.bf16.mxu0 %v3411_v36  ;;  %v3473_v36 = vld [vmem:[%s3941_s9 + $0xc0] sm:$0xff]  }
 0x17f   :  { %2112 = vmatpush1.bf16.msra.mxu1 %v3408_v37  ;;  %v3474_v37 = vld [vmem:[%s3941_s9 + $0x140] sm:$0xff]  }
 0x180   :  { %3092 = vmatpush3.bf16.msra.mxu0 %v3412_v38  ;;  %2113 = vmatprep.subr.bf16.mxu1 %v3415_v39  ;;  %v3475_v38 = vld [vmem:[%s3941_s9 + $0x80] sm:$0xff]   ;;  %v3477_v39 = vld [vmem:[%s3941_s9 + $0xc8] sm:$0xff]  }
 0x181   :  { %3093 = vmatprep.subr.bf16.mxu0 %v3416_v40  ;;  %v3479_v40 = vld [vmem:[%s3941_s9 + $0x88] sm:$0xff]  }
 0x183   :  { %2114 = vmatpush1.bf16.msra.mxu1 %v3413_v41  ;;  %v3481_v41 = vld [vmem:[%s3941_s9 + $0xd0] sm:$0xff]  }
 0x184   :  { %3094 = vmatpush3.bf16.msra.mxu0 %v3417_v42  ;;  %2115 = vmatprep.subr.bf16.mxu1 %v3420_v43  ;;  %v3483_v42 = vld [vmem:[%s3941_s9 + $0x90] sm:$0xff]   ;;  %v3485_v43 = vld [vmem:[%s3941_s9 + $0xd8] sm:$0xff]  }
 0x185   :  { %3095 = vmatprep.subr.bf16.mxu0 %v3421_v44  ;;  %v3487_v44 = vld [vmem:[%s3941_s9 + $0x98] sm:$0xff]  }
 0x187   :  { %2116 = vmatpush1.bf16.msra.mxu1 %v3418_v45  ;;  %v3489_v45 = vld [vmem:[%s3941_s9 + $0xe0] sm:$0xff]  }
 0x188   :  { %3096 = vmatpush3.bf16.msra.mxu0 %v3422_v46  ;;  %2117 = vmatprep.subr.bf16.mxu1 %v3425_v47  ;;  %v3491_v46 = vld [vmem:[%s3941_s9 + $0xa0] sm:$0xff]   ;;  %v3493_v47 = vld [vmem:[%s3941_s9 + $0xe8] sm:$0xff]  }
 0x189   :  { %3097 = vmatprep.subr.bf16.mxu0 %v3426_v48  ;;  %v3495_v48 = vld [vmem:[%s3941_s9 + $0xa8] sm:$0xff]  }
 0x18b   :  { %2118 = vmatpush1.bf16.msra.mxu1 %v3423_v49  ;;  %v3497_v49 = vld [vmem:[%s3941_s9 + $0xf0] sm:$0xff]  }
 0x18c   :  { %3098 = vmatpush3.bf16.msra.mxu0 %v3427_v50  ;;  %2119 = vmatprep.subr.bf16.mxu1 %v3430_v51  ;;  %v3499_v51 = vld [vmem:[%s3941_s9 + $0xb0] sm:$0xff]  }
 0x18d   :  { %3099 = vmatprep.subr.bf16.mxu0 %v3431_v53 }
 0x18f   :  { %2120 = vmatpush1.bf16.msra.mxu1 %v3428_v54 }
 0x190   :  { %3100 = vmatpush3.bf16.msra.mxu0 %v3432_v55  ;;  %2121 = vmatprep.subr.bf16.mxu1 %v3435_v56 }
 0x191   :  { %3107 = vmatprep.subr.bf16.mxu0 %v3457_v59 }
 0x193   :  { %2219 = vmatmul.mubr.bf16.vlgmr.msra.gmra.mrb[16].mxu0 %v1405_v62  ;;  %2122 = vmatpush1.bf16.msra.mxu1 %v3433_v52  ;;  %v3503_v52 = vld [vmem:[%s3941_s9 + $0xb8] sm:$0xff]  }
 0x194   :  { %2123 = vmatprep.subr.bf16.mxu1 %v3438_v60  ;;  %3108 = vmatpush3.bf16.msra.mxu0 %v3458_v61  ;;  %v714_v60 = vrot.slane %v709_v26, %v3709_v30  ;;  %v718_v61 = vrot.slane %v709_v26, %v3717_v32  ;;  %v3504_v26 = vld [vmem:[%s3941_s9 + $0x138] sm:$0xff]  }
 0x195   :  { %3109 = vmatprep.subr.bf16.mxu0 %v3459_v14 }
 0x197   :  { %2124 = vmatpush1.bf16.msra.mxu1 %v3436_v63 }
 0x198   :  { %2125 = vmatprep.subr.bf16.mxu1 %v3441_v57  ;;  %3110 = vmatpush3.bf16.msra.mxu0 %v3460_v0 }
 0x199   :  { %3111 = vmatprep.subr.bf16.mxu0 %v3461_v1 }
 0x19b   :  { %2126 = vmatpush1.bf16.msra.mxu1 %v3439_v2 }
 0x19c   :  { %2127 = vmatprep.subr.bf16.mxu1 %v3444_v5  ;;  %3112 = vmatpush3.bf16.msra.mxu0 %v3462_v6 }
 0x19d   :  { %3113 = vmatprep.subr.bf16.mxu0 %v3463_v7  ;;  %v3476_v7 = vld [vmem:[%s3941_s9 + $0x100] sm:$0xff]  }
 0x19f   :  { %2128 = vmatpush1.bf16.msra.mxu1 %v3442_v4 }
 0x1a0   :  { %2129 = vmatprep.subr.bf16.mxu1 %v3447_v3  ;;  %3114 = vmatpush3.bf16.msra.mxu0 %v3464_v8  ;;  %v3478_v3 = vld [vmem:[%s3941_s9 + $0x148] sm:$0xff]  }
 0x1a1   :  { %3115 = vmatprep.subr.bf16.mxu0 %v3465_v9  ;;  %v3480_v8 = vld [vmem:[%s3941_s9 + $0x108] sm:$0xff]   ;;  %v3482_v9 = vld [vmem:[%s3941_s9 + $0x150] sm:$0xff]  }
 0x1a3   :  { %2130 = vmatpush1.bf16.msra.mxu1 %v3445_v10  ;;  %v3484_v10 = vld [vmem:[%s3941_s9 + $0x110] sm:$0xff]  }
 0x1a4   :  { %2131 = vmatprep.subr.bf16.mxu1 %v3450_v11  ;;  %3116 = vmatpush3.bf16.msra.mxu0 %v3466_v12  ;;  %v3486_v11 = vld [vmem:[%s3941_s9 + $0x158] sm:$0xff]  }
 0x1a5   :  { %3117 = vmatprep.subr.bf16.mxu0 %v3467_v13  ;;  %v3488_v12 = vld [vmem:[%s3941_s9 + $0x118] sm:$0xff]   ;;  %v3490_v13 = vld [vmem:[%s3941_s9 + $0x160] sm:$0xff]  }
 0x1a7   :  { %2132 = vmatpush1.bf16.msra.mxu1 %v3448_v31  ;;  %v3492_v31 = vld [vmem:[%s3941_s9 + $0x120] sm:$0xff]  }
 0x1a8   :  { %2133 = vmatprep.subr.bf16.mxu1 %v3453_v17  ;;  %3118 = vmatpush3.bf16.msra.mxu0 %v3468_v18  ;;  %v3494_v17 = vld [vmem:[%s3941_s9 + $0x168] sm:$0xff]  }
 0x1a9   :  { %3119 = vmatprep.subr.bf16.mxu0 %v3469_v19  ;;  %v3496_v18 = vld [vmem:[%s3941_s9 + $0x128] sm:$0xff]   ;;  %v3498_v19 = vld [vmem:[%s3941_s9 + $0x170] sm:$0xff]  }
 0x1ab   :  { %2134 = vmatpush1.bf16.msra.mxu1 %v3451_v20  ;;  %v3500_v20 = vld [vmem:[%s3941_s9 + $0x130] sm:$0xff]  }
 0x1ac   :  { %2135 = vmatprep.subr.bf16.mxu1 %v3456_v21  ;;  %3120 = vmatpush3.bf16.msra.mxu0 %v3470_v22  ;;  %v3502_v21 = vld [vmem:[%s3941_s9 + $0x178] sm:$0xff]  }
 0x1ad   :  { %3121 = vmatprep.subr.bf16.mxu0 %v3471_v23 }
 0x1af   :  { %2136 = vmatpush1.bf16.msra.mxu1 %v3454_v24 }
 0x1b0   :  { %3122 = vmatpush3.bf16.msra.mxu0 %v3472_v25  ;;  %3129 = vmatprep.subr.bf16.mxu1 %v3473_v36 }
 0x1b1   :  { %3151 = vmatprep.subr.bf16.mxu0 %v3474_v37 }
 0x1b2   :  { %2138 = vmatmul.mubr.bf16.vlgmr.msra.gmra.mrb[32].mxu1 %v1405_v62 }
 0x1b3   :  { %3130 = vmatpush3.bf16.msra.mxu1 %v3475_v38 }
 0x1b4   :  { %3131 = vmatprep.subr.bf16.mxu1 %v3477_v39 }
 0x1b7   :  { %3132 = vmatpush3.bf16.msra.mxu1 %v3479_v40 }
 0x1b8   :  { %3133 = vmatprep.subr.bf16.mxu1 %v3481_v41 }
 0x1bb   :  { %3134 = vmatpush3.bf16.msra.mxu1 %v3483_v42 }
 0x1bc   :  { %3135 = vmatprep.subr.bf16.mxu1 %v3485_v43 }
 0x1bf   :  { %3136 = vmatpush3.bf16.msra.mxu1 %v3487_v44 }
 0x1c0   :  { %3137 = vmatprep.subr.bf16.mxu1 %v3489_v45 }
 0x1c3   :  { %3138 = vmatpush3.bf16.msra.mxu1 %v3491_v46 }
 0x1c4   :  { %3139 = vmatprep.subr.bf16.mxu1 %v3493_v47 }
 0x1c7   :  { %3140 = vmatpush3.bf16.msra.mxu1 %v3495_v48 }
 0x1c8   :  { %3141 = vmatprep.subr.bf16.mxu1 %v3497_v49 }
 0x1cb   :  { %3142 = vmatpush3.bf16.msra.mxu1 %v3499_v51 }
 0x1cc   :  { %3143 = vmatprep.subr.bf16.mxu1 %v3501_v58 }
 0x1cf   :  { %3144 = vmatpush3.bf16.msra.mxu1 %v3503_v52 }
 0x1e5   :  { %v3035_v15 = vpop.f32.mrb[24].mxu1 }
 0x1e6   :  { %v3036_v28 = vpop.f32.mrb[25].mxu1 }
 0x1e7   :  { %v3037_v16 = vadd.f32 %v3036_v28, %v3035_v15  ;;  %v3038_v29 = vpop.f32.mrb[26].mxu1 }
 0x1e8   :  { %v3039_v34 = vpop.f32.mrb[27].mxu1 }
 0x1e9   :  { %v1355_v35 = vadd.f32 %v3037_v16, %v722_v27  ;;  %v1535_v27 = vld [vmem:[%s3940_s8] sm:$0x7] }
 0x1ea   :  { %v1548_v28 = vrot.slane %v1535_v27, %v3737_v33  ;;  %v1540_v41 = vrot.slane %v1535_v27, %v3709_v30  ;;  %v1544_v42 = vrot.slane %v1535_v27, %v3717_v32 }
 0x205   :  { %v3057_v50 = vpop.f32.mrb[28].mxu1 }
 0x206   :  { %v3058_v53 = vpop.f32.mrb[29].mxu1 }
 0x207   :  { %v3059_v54 = vadd.f32 %v3058_v53, %v3057_v50  ;;  %v3060_v55 = vpop.f32.mrb[30].mxu1 }
 0x208   :  { %v3061_v56 = vpop.f32.mrb[31].mxu1 }
 0x209   :  { %v3867_v59 = vadd.f32 %v3059_v54, %v1355_v35 }
 0x20b   :  { %v1402_v46 = vmax.f32 %v3867_v59, 0.0  ;;  %v2970_v59 = vld [vmem:[%s3942_s10] ss:$0 sm:$0xff] }
 0x20d   :  { %v2231_v53 = vpack.c.bf16 %v1402_v46, %v1402_v46 }
 0x225   :  { %v1313_v62 = vpop.f32.mrb[8].mxu0 }
 0x226   :  { %v3173_v14 = vadd.f32 %v1313_v62, %v714_v60  ;;  %v1315_v63 = vpop.f32.mrb[9].mxu0 }
 0x227   :  { %v3174_v57 = vadd.f32 %v1315_v63, %v718_v61  ;;  %v1317_v0 = vpop.f32.mrb[10].mxu0 }
 0x228   :  { %v1400_v1 = vmax.f32 %v3173_v14, 0.0  ;;  %v1318_v2 = vpop.f32.mrb[11].mxu0 }
 0x229   :  { %v1401_v5 = vmax.f32 %v3174_v57, 0.0 }
 0x22a   :  { %v2229_v4 = vpack.c.bf16 %v1400_v1, %v1400_v1 }
 0x22b   :  { %v2230_v6 = vpack.c.bf16 %v1401_v5, %v1401_v5 }
 0x22d   :  { %2658 = vmatprep.mubr.bf16.mxu0 %v2230_v6 }
 0x22e   :  { %2659 = vmatmul.mubr.bf16.vlgmr.msra.gmra.mrb[20].mxu0 %v2229_v4 }
 0x22f   :  { %3152 = vmatpush3.bf16.msra.mxu0 %v3476_v7 }
 0x230   :  { %3153 = vmatprep.subr.bf16.mxu0 %v3478_v3 }
 0x233   :  { %3154 = vmatpush3.bf16.msra.mxu0 %v3480_v8 }
 0x234   :  { %3155 = vmatprep.subr.bf16.mxu0 %v3482_v9 }
 0x237   :  { %3156 = vmatpush3.bf16.msra.mxu0 %v3484_v10 }
 0x238   :  { %3157 = vmatprep.subr.bf16.mxu0 %v3486_v11 }
 0x23b   :  { %3158 = vmatpush3.bf16.msra.mxu0 %v3488_v12 }
 0x23c   :  { %3159 = vmatprep.subr.bf16.mxu0 %v3490_v13 }
 0x23f   :  { %3160 = vmatpush3.bf16.msra.mxu0 %v3492_v31 }
 0x240   :  { %3161 = vmatprep.subr.bf16.mxu0 %v3494_v17 }
 0x243   :  { %3162 = vmatpush3.bf16.msra.mxu0 %v3496_v18 }
 0x244   :  { %3163 = vmatprep.subr.bf16.mxu0 %v3498_v19 }
 0x245   :  { %v3079_v22 = vpop.f32.mrb[12].mxu0 }
 0x246   :  { %v3080_v23 = vpop.f32.mrb[13].mxu0 }
 0x247   :  { %v3081_v24 = vadd.f32 %v3080_v23, %v3079_v22  ;;  %v3082_v25 = vpop.f32.mrb[14].mxu0  ;;  %3164 = vmatpush3.bf16.msra.mxu0 %v3500_v20 }
 0x248   :  { %v3083_v15 = vpop.f32.mrb[15].mxu0  ;;  %3165 = vmatprep.subr.bf16.mxu0 %v3502_v21 }
 0x249   :  { %v2181_v34 = vadd.f32 %v3081_v24, %v1548_v28 }
 0x24b   :  { %3166 = vmatpush3.bf16.msra.mxu0 %v3504_v26 }
 0x266   :  { %v3101_v16 = vpop.f32.mrb[16].mxu0 }
 0x267   :  { %v3102_v29 = vpop.f32.mrb[17].mxu0 }
 0x268   :  { %v3103_v35 = vadd.f32 %v3102_v29, %v3101_v16  ;;  %v3104_v36 = vpop.f32.mrb[18].mxu0 }
 0x269   :  { %v3105_v37 = vpop.f32.mrb[19].mxu0 }
 0x26a   :  { %v2221_v38 = vadd.f32 %v3103_v35, %v2181_v34 }
 0x26c   :  { %v2228_v39 = vmax.f32 %v2221_v38, 0.0 }
 0x26e   :  { %v2234_v40 = vpack.c.bf16 %v2228_v39, %v2228_v39 }
 0x270   :  { %2738 = vmatprep.mubr.bf16.mxu0 %v2234_v40 }
 0x285   :  { %v2139_v43 = vpop.f32.mrb[32].mxu1 }
 0x286   :  { %v3175_v44 = vadd.f32 %v2139_v43, %v1540_v41  ;;  %v2141_v45 = vpop.f32.mrb[33].mxu1 }
 0x287   :  { %v3176_v33 = vadd.f32 %v2141_v45, %v1544_v42  ;;  %v2143_v47 = vpop.f32.mrb[34].mxu1 }
 0x288   :  { %v2226_v48 = vmax.f32 %v3175_v44, 0.0  ;;  %v2144_v49 = vpop.f32.mrb[35].mxu1 }
 0x289   :  { %v2227_v50 = vmax.f32 %v3176_v33, 0.0 }
 0x28a   :  { %v2232_v51 = vpack.c.bf16 %v2226_v48, %v2226_v48 }
 0x28b   :  { %v2233_v54 = vpack.c.bf16 %v2227_v50, %v2227_v50 }
 0x28c   :  { %2698 = vmatprep.mubr.bf16.mxu1 %v2232_v51 }
 0x28d   :  { %2699 = vmatmul.mubr.bf16.vlgmr.msra.gmra.mrb[36].mxu1 %v2231_v53  ;;  %2739 = vmatmul.mubr.bf16.vlgmr.msra.gmra.mrb[24].mxu0 %v2233_v54 }
 0x301   :  { %v3123_v55 = vpop.f32.mrb[20].mxu0 }
 0x302   :  { %v3124_v30 = vpop.f32.mrb[21].mxu0 }
 0x303   :  { %v3125_v56 = vadd.f32 %v3124_v30, %v3123_v55  ;;  %v3126_v32 = vpop.f32.mrb[22].mxu0 }
 0x304   :  { %v3127_v58 = vpop.f32.mrb[23].mxu0 }
 0x305   :  { %v2661_v14 = vadd.f32 %v3125_v56, %v2970_v59 }
 0x360   :  { %v3145_v52 = vpop.f32.mrb[36].mxu1  ;;  %v3167_v60 = vpop.f32.mrb[24].mxu0 }
 0x361   :  { %v3146_v61 = vpop.f32.mrb[37].mxu1  ;;  %v3168_v62 = vpop.f32.mrb[25].mxu0 }
 0x362   :  { %v3147_v63 = vadd.f32 %v3146_v61, %v3145_v52  ;;  %v3169_v57 = vadd.f32 %v3168_v62, %v3167_v60  ;;  %v3148_v0 = vpop.f32.mrb[38].mxu1  ;;  %v3170_v1 = vpop.f32.mrb[26].mxu0 }
 0x363   :  { %v3149_v2 = vpop.f32.mrb[39].mxu1  ;;  %v3171_v5 = vpop.f32.mrb[27].mxu0 }
 0x364   :  { %v2701_v6 = vadd.f32 %v3147_v63, %v2661_v14 }
 0x366   :  { %v2741_v7 = vadd.f32 %v3169_v57, %v2701_v6 }
 0x368   :  { %2747 = vst.msk [vmem:[%s3943_s11] sm:$0xff] %vm2746_vm4, %v2741_v7 }
 0x369   :  { %2752 = vsyncpa [#allocation3], 1 }
 0x36a   :  { %2753 = vsyncpa [#allocation5], 1 }

</bundles_post_ra>
